<compile_context>
chip_gen: v7x
topology: tpu7x:2x2x1
jax: 0.10.0
libtpu: 0.0.40
codegen_flags: <defaults>
</compile_context>

<pallas_src>
import jax
import jax.numpy as jnp
import numpy as np
from jax import lax
from jax.experimental import pallas as pl
from jax.experimental.pallas import tpu as pltpu

# Small configuration consistent with the module's forward-pass constraints.
B = 2     # batch
E = 32    # embedding_dim
H = 32    # hidden_dim (must equal E for the reference forward to run)
V = 128   # vocabulary_size
T = 8     # max_seq_length (inference / target=None)

W_SLAB = V + 3 * H + E   # 256: [wout (V) | whh r|z|n (3H) | wlp (E)]


def _decoder_kernel(latent_ref, wslab_ref, emb_gates_ref, bslab_ref, out_ref):
    """Whole greedy decode in one kernel invocation (no grid).

    wslab : (H, W_SLAB) bf16  = [wout | whh_r | whh_z | whh_n | wlp]
    bslab : (1, W_SLAB) f32   = [bout | bhh_r | bhh_z | bhh_n | blp]
    emb_gates : (V, 3H) f32   = emb @ [wih_r | wih_z | wih_n] + bih (bias folded)
    """
    lane_iota = lax.broadcasted_iota(jnp.int32, (B, V), 1)   # hoisted once

    wslab = wslab_ref[...]          # (H, 256) bf16
    bslab = bslab_ref[...]          # (1, 256) f32
    emb_gates = emb_gates_ref[...]  # (V, 96)  f32

    # hidden init: h0 = latent @ wlp + blp  (lanes V+3H : V+3H+E of the fused dot)
    g = jnp.dot(latent_ref[...].astype(jnp.bfloat16), wslab,
                preferred_element_type=jnp.float32) + bslab
    h = g[:, V + 3 * H:]                                     # (B, H) f32

    # Pipeline prologue: gh_0 = h0 @ whh + bhh (pred lanes of this dot are unused).
    g = jnp.dot(h.astype(jnp.bfloat16), wslab,
                preferred_element_type=jnp.float32) + bslab
    gh = g[:, V:V + 3 * H]                                    # (B, 3H) f32

    # decoder_input[:, 0] = 1 (start token), kept as a one-hot row over the vocab.
    onehot = (lane_iota == 1).astype(jnp.float32)

    for t in range(T):   # T is tiny and static: fully unrolled for LLO visibility
        # Token's fused input-gate pre-activations: exact one-hot row select of the
        # precomputed (V, 3H) table (bih already folded; one-hot has a single 1.0).
        gi = jnp.dot(onehot, emb_gates, preferred_element_type=jnp.float32)  # (B, 3H)

        # GRU cell (PyTorch gate order r|z|n); one EUP sigmoid pass for r & z.
        rz = jax.nn.sigmoid(gi[:, :2 * H] + gh[:, :2 * H])
        r = rz[:, :H]
        z = rz[:, H:]
        n = jnp.tanh(gi[:, 2 * H:] + r * gh[:, 2 * H:])
        h = (1.0 - z) * n + z * h                              # h_{t+1}

        # Fused h-dot: [pred_t | gh_{t+1} | (discarded)] in one MXU issue.
        # wout occupies lanes 0:V so the argmax-critical pred tile drains first.
        g = jnp.dot(h.astype(jnp.bfloat16), wslab,
                    preferred_element_type=jnp.float32) + bslab
        pred = g[:, :V]                                        # (B, V) f32 logits
        gh = g[:, V:V + 3 * H]                                 # carried to step t+1

        # Static, lane-aligned 128-wide store of this step's logits.
        out_ref[:, t * V:(t + 1) * V] = pred

        # Greedy argmax (first-max tie-break, matches torch.argmax) -> next one-hot.
        maxv = jnp.max(pred, axis=1, keepdims=True)
        idx = jnp.min(jnp.where(pred == maxv, lane_iota, V),
                      axis=1, keepdims=True)
        onehot = (lane_iota == idx).astype(jnp.float32)


def molecule_decoder_forward(latent, params):
    wlp, blp, emb, wih, whh, bih, bhh, wout, bout = params
    bf = jnp.bfloat16

    # --- layout / precision plumbing (outside the kernel) ---
    wih_cat = jnp.concatenate([wih[0], wih[1], wih[2]], axis=1)   # (E, 3H)
    whh_cat = jnp.concatenate([whh[0], whh[1], whh[2]], axis=1)   # (H, 3H)
    bih_cat = jnp.concatenate([bih[0], bih[1], bih[2]], axis=1)   # (1, 3H)
    bhh_cat = jnp.concatenate([bhh[0], bhh[1], bhh[2]], axis=1)   # (1, 3H)

    # Precompute token -> input-gate pre-activations (bf16 operands, f32 accumulate,
    # kept in f32 so the in-kernel one-hot select reproduces the reference exactly).
    emb_gates = jnp.dot(emb.astype(bf), wih_cat.astype(bf),
                        preferred_element_type=jnp.float32) + bih_cat  # (V, 3H) f32

    # One bf16 weight slab [wout | whh | wlp] and one matching f32 bias slab.
    wslab = jnp.concatenate([wout, whh_cat, wlp], axis=1).astype(bf)   # (H, 256)
    bslab = jnp.concatenate([bout, bhh_cat, blp], axis=1)              # (1, 256) f32

    vmem = pl.BlockSpec(memory_space=pltpu.MemorySpace.VMEM)
    out_flat = pl.pallas_call(
        _decoder_kernel,
        out_shape=jax.ShapeDtypeStruct((B, T * V), jnp.float32),
        in_specs=[vmem] * 4,
        out_specs=vmem,
    )(latent, wslab, emb_gates, bslab)

    # (B, T*V) -> (B, T, V): PyTorch returns (batch, max_length, vocabulary_size)
    return out_flat.reshape(B, T, V)


def init_params(key):
    ks = jax.random.split(key, 9)
    s = 0.2
    wlp = s * jax.random.normal(ks[0], (E, E), jnp.float32)
    blp = s * jax.random.normal(ks[1], (1, E), jnp.float32)
    emb = s * jax.random.normal(ks[2], (V, E), jnp.float32)
    wih = s * jax.random.normal(ks[3], (3, E, H), jnp.float32)
    whh = s * jax.random.normal(ks[4], (3, H, H), jnp.float32)
    bih = s * jax.random.normal(ks[5], (3, 1, H), jnp.float32)
    bhh = s * jax.random.normal(ks[6], (3, 1, H), jnp.float32)
    wout = s * jax.random.normal(ks[7], (H, V), jnp.float32)
    bout = s * jax.random.normal(ks[8], (1, V), jnp.float32)
    return (wlp, blp, emb, wih, whh, bih, bhh, wout, bout)


def reference_forward(latent, params):
    """Pure-JAX mirror of the PyTorch forward (target=None, greedy decode).

    Matmul operands are cast to bf16 with f32 accumulation so the reference uses
    the same arithmetic the kernel does (the explicitly sanctioned precision).
    """
    wlp, blp, emb, wih, whh, bih, bhh, wout, bout = params

    def mm(a, w):
        return jnp.dot(a.astype(jnp.bfloat16), w.astype(jnp.bfloat16),
                       preferred_element_type=jnp.float32)

    h = mm(latent, wlp) + blp[0]
    tok = jnp.ones((latent.shape[0],), jnp.int32)   # start token id = 1
    outs = []
    for _ in range(T):
        x = emb[tok]
        r = jax.nn.sigmoid(mm(x, wih[0]) + bih[0, 0] + mm(h, whh[0]) + bhh[0, 0])
        z = jax.nn.sigmoid(mm(x, wih[1]) + bih[1, 0] + mm(h, whh[1]) + bhh[1, 0])
        n = jnp.tanh(mm(x, wih[2]) + bih[2, 0] + r * (mm(h, whh[2]) + bhh[2, 0]))
        h = (1.0 - z) * n + z * h
        pred = mm(h, wout) + bout[0]
        outs.append(pred)
        tok = jnp.argmax(pred, axis=1).astype(jnp.int32)
    return jnp.stack(outs, axis=1)   # (B, T, V)


if __name__ == "__main__":
    key = jax.random.PRNGKey(0)
    pkey, lkey = jax.random.split(key)
    params = init_params(pkey)
    latent = jax.random.normal(lkey, (B, E), jnp.float32)

    out = molecule_decoder_forward(latent, params)
    out = jax.block_until_ready(out)
    assert out.shape == (B, T, V), out.shape

    ref = reference_forward(latent, params)
    np.testing.assert_allclose(np.asarray(out), np.asarray(ref),
                               rtol=2e-3, atol=2e-3)
    print("KERNEL_OK")
</pallas_src>

<mosaic_0001>
module attributes {stable_mosaic.version = 11 : i64} {
  func.func @_decoder_kernel(%arg0: memref<2x32xf32, #tpu.memory_space<vmem>>, %arg1: memref<32x256xbf16, #tpu.memory_space<vmem>>, %arg2: memref<128x96xf32, #tpu.memory_space<vmem>>, %arg3: memref<1x256xf32, #tpu.memory_space<vmem>>, %arg4: memref<2x1024xf32, #tpu.memory_space<vmem>>) attributes {dimension_semantics = [], scalar_prefetch = 0 : i64, scratch_operands = 0 : i64, tpu.core_type = #tpu.core_type<tc>} {
    %0 = tpu.iota {dimensions = array<i32: 1>} : vector<2x128xi32>
    %c0 = arith.constant 0 : index
    %c0_0 = arith.constant 0 : index
    %1 = vector.load %arg1[%c0, %c0_0] : memref<32x256xbf16, #tpu.memory_space<vmem>>, vector<32x256xbf16>
    %c0_1 = arith.constant 0 : index
    %c0_2 = arith.constant 0 : index
    %2 = vector.load %arg3[%c0_1, %c0_2] : memref<1x256xf32, #tpu.memory_space<vmem>>, vector<1x256xf32>
    %c0_3 = arith.constant 0 : index
    %c0_4 = arith.constant 0 : index
    %3 = vector.load %arg2[%c0_3, %c0_4] : memref<128x96xf32, #tpu.memory_space<vmem>>, vector<128x96xf32>
    %c0_5 = arith.constant 0 : index
    %c0_6 = arith.constant 0 : index
    %4 = vector.load %arg0[%c0_5, %c0_6] : memref<2x32xf32, #tpu.memory_space<vmem>>, vector<2x32xf32>
    %5 = arith.truncf %4 : vector<2x32xf32> to vector<2x32xbf16>
    %cst = arith.constant dense<0.000000e+00> : vector<2x256xf32>
    %6 = tpu.matmul %5, %1, %cst {dimension_numbers = #tpu.dot_dimension_numbers<[1], [0], [0], [1], [0, 0, 1, 1], [], []>} : vector<2x32xbf16>, vector<32x256xbf16>, vector<2x256xf32> -> vector<2x256xf32>
    %7 = vector.broadcast %2 : vector<1x256xf32> to vector<2x256xf32>
    %8 = arith.addf %6, %7 : vector<2x256xf32>
    %9 = vector.extract_strided_slice %8 {offsets = [0, 224], sizes = [2, 32], strides = [1, 1]} : vector<2x256xf32> to vector<2x32xf32>
    %10 = arith.truncf %9 : vector<2x32xf32> to vector<2x32xbf16>
    %cst_7 = arith.constant dense<0.000000e+00> : vector<2x256xf32>
    %11 = tpu.matmul %10, %1, %cst_7 {dimension_numbers = #tpu.dot_dimension_numbers<[1], [0], [0], [1], [0, 0, 1, 1], [], []>} : vector<2x32xbf16>, vector<32x256xbf16>, vector<2x256xf32> -> vector<2x256xf32>
    %12 = vector.broadcast %2 : vector<1x256xf32> to vector<2x256xf32>
    %13 = arith.addf %11, %12 : vector<2x256xf32>
    %14 = vector.extract_strided_slice %13 {offsets = [0, 128], sizes = [2, 96], strides = [1, 1]} : vector<2x256xf32> to vector<2x96xf32>
    %c1_i32 = arith.constant 1 : i32
    %15 = vector.broadcast %c1_i32 : i32 to vector<2x128xi32>
    %16 = arith.cmpi eq, %0, %15 : vector<2x128xi32>
    %17 = arith.extui %16 : vector<2x128xi1> to vector<2x128xi32>
    %18 = arith.sitofp %17 : vector<2x128xi32> to vector<2x128xf32>
    %cst_8 = arith.constant dense<0.000000e+00> : vector<2x96xf32>
    %19 = tpu.matmul %18, %3, %cst_8 {dimension_numbers = #tpu.dot_dimension_numbers<[1], [0], [0], [1], [0, 0, 1, 1], [], []>} : vector<2x128xf32>, vector<128x96xf32>, vector<2x96xf32> -> vector<2x96xf32>
    %20 = vector.extract_strided_slice %19 {offsets = [0, 0], sizes = [2, 64], strides = [1, 1]} : vector<2x96xf32> to vector<2x64xf32>
    %21 = vector.extract_strided_slice %14 {offsets = [0, 0], sizes = [2, 64], strides = [1, 1]} : vector<2x96xf32> to vector<2x64xf32>
    %22 = arith.addf %20, %21 : vector<2x64xf32>
    %23 = arith.negf %22 : vector<2x64xf32>
    %24 = math.exp %23 : vector<2x64xf32>
    %cst_9 = arith.constant 1.000000e+00 : f32
    %25 = vector.broadcast %cst_9 : f32 to vector<2x64xf32>
    %26 = arith.addf %25, %24 : vector<2x64xf32>
    %27 = arith.divf %25, %26 : vector<2x64xf32>
    %28 = vector.extract_strided_slice %27 {offsets = [0, 0], sizes = [2, 32], strides = [1, 1]} : vector<2x64xf32> to vector<2x32xf32>
    %29 = vector.extract_strided_slice %27 {offsets = [0, 32], sizes = [2, 32], strides = [1, 1]} : vector<2x64xf32> to vector<2x32xf32>
    %30 = vector.extract_strided_slice %19 {offsets = [0, 64], sizes = [2, 32], strides = [1, 1]} : vector<2x96xf32> to vector<2x32xf32>
    %31 = vector.extract_strided_slice %14 {offsets = [0, 64], sizes = [2, 32], strides = [1, 1]} : vector<2x96xf32> to vector<2x32xf32>
    %32 = arith.mulf %28, %31 : vector<2x32xf32>
    %33 = arith.addf %30, %32 : vector<2x32xf32>
    %34 = math.tanh %33 : vector<2x32xf32>
    %cst_10 = arith.constant 1.000000e+00 : f32
    %35 = vector.broadcast %cst_10 : f32 to vector<2x32xf32>
    %36 = arith.subf %35, %29 : vector<2x32xf32>
    %37 = arith.mulf %36, %34 : vector<2x32xf32>
    %38 = arith.mulf %29, %9 : vector<2x32xf32>
    %39 = arith.addf %37, %38 : vector<2x32xf32>
    %40 = arith.truncf %39 : vector<2x32xf32> to vector<2x32xbf16>
    %cst_11 = arith.constant dense<0.000000e+00> : vector<2x256xf32>
    %41 = tpu.matmul %40, %1, %cst_11 {dimension_numbers = #tpu.dot_dimension_numbers<[1], [0], [0], [1], [0, 0, 1, 1], [], []>} : vector<2x32xbf16>, vector<32x256xbf16>, vector<2x256xf32> -> vector<2x256xf32>
    %42 = vector.broadcast %2 : vector<1x256xf32> to vector<2x256xf32>
    %43 = arith.addf %41, %42 : vector<2x256xf32>
    %44 = vector.extract_strided_slice %43 {offsets = [0, 0], sizes = [2, 128], strides = [1, 1]} : vector<2x256xf32> to vector<2x128xf32>
    %45 = vector.extract_strided_slice %43 {offsets = [0, 128], sizes = [2, 96], strides = [1, 1]} : vector<2x256xf32> to vector<2x96xf32>
    %c0_12 = arith.constant 0 : index
    %c0_13 = arith.constant 0 : index
    %46 = vector.load %arg4[%c0_12, %c0_13] : memref<2x1024xf32, #tpu.memory_space<vmem>>, vector<2x128xf32>
    tpu.vector_store %arg4[%c0_12, %c0_13], %44 {strides = array<i32>} : memref<2x1024xf32, #tpu.memory_space<vmem>>, vector<2x128xf32>,
    %cst_14 = arith.constant dense<0xFF800000> : vector<2xf32>
    %47 = vector.multi_reduction <maximumf>, %44, %cst_14 [1] : vector<2x128xf32> to vector<2xf32>
    %48 = vector.shape_cast %47 : vector<2xf32> to vector<2x1xf32>
    %49 = vector.broadcast %48 : vector<2x1xf32> to vector<2x128xf32>
    %50 = arith.cmpf oeq, %44, %49 : vector<2x128xf32>
    %c128_i32 = arith.constant 128 : i32
    %51 = vector.broadcast %c128_i32 : i32 to vector<2x128xi32>
    %52 = arith.select %50, %0, %51 : vector<2x128xi1>, vector<2x128xi32>
    %cst_15 = arith.constant dense<2147483647> : vector<2xi32>
    %53 = vector.multi_reduction <minsi>, %52, %cst_15 [1] : vector<2x128xi32> to vector<2xi32>
    %54 = vector.shape_cast %53 : vector<2xi32> to vector<2x1xi32>
    %55 = vector.broadcast %54 : vector<2x1xi32> to vector<2x128xi32>
    %56 = arith.cmpi eq, %0, %55 : vector<2x128xi32>
    %57 = arith.extui %56 : vector<2x128xi1> to vector<2x128xi32>
    %58 = arith.sitofp %57 : vector<2x128xi32> to vector<2x128xf32>
    %cst_16 = arith.constant dense<0.000000e+00> : vector<2x96xf32>
    %59 = tpu.matmul %58, %3, %cst_16 {dimension_numbers = #tpu.dot_dimension_numbers<[1], [0], [0], [1], [0, 0, 1, 1], [], []>} : vector<2x128xf32>, vector<128x96xf32>, vector<2x96xf32> -> vector<2x96xf32>
    %60 = vector.extract_strided_slice %59 {offsets = [0, 0], sizes = [2, 64], strides = [1, 1]} : vector<2x96xf32> to vector<2x64xf32>
    %61 = vector.extract_strided_slice %45 {offsets = [0, 0], sizes = [2, 64], strides = [1, 1]} : vector<2x96xf32> to vector<2x64xf32>
    %62 = arith.addf %60, %61 : vector<2x64xf32>
    %63 = arith.negf %62 : vector<2x64xf32>
    %64 = math.exp %63 : vector<2x64xf32>
    %cst_17 = arith.constant 1.000000e+00 : f32
    %65 = vector.broadcast %cst_17 : f32 to vector<2x64xf32>
    %66 = arith.addf %65, %64 : vector<2x64xf32>
    %67 = arith.divf %65, %66 : vector<2x64xf32>
    %68 = vector.extract_strided_slice %67 {offsets = [0, 0], sizes = [2, 32], strides = [1, 1]} : vector<2x64xf32> to vector<2x32xf32>
    %69 = vector.extract_strided_slice %67 {offsets = [0, 32], sizes = [2, 32], strides = [1, 1]} : vector<2x64xf32> to vector<2x32xf32>
    %70 = vector.extract_strided_slice %59 {offsets = [0, 64], sizes = [2, 32], strides = [1, 1]} : vector<2x96xf32> to vector<2x32xf32>
    %71 = vector.extract_strided_slice %45 {offsets = [0, 64], sizes = [2, 32], strides = [1, 1]} : vector<2x96xf32> to vector<2x32xf32>
    %72 = arith.mulf %68, %71 : vector<2x32xf32>
    %73 = arith.addf %70, %72 : vector<2x32xf32>
    %74 = math.tanh %73 : vector<2x32xf32>
    %cst_18 = arith.constant 1.000000e+00 : f32
    %75 = vector.broadcast %cst_18 : f32 to vector<2x32xf32>
    %76 = arith.subf %75, %69 : vector<2x32xf32>
    %77 = arith.mulf %76, %74 : vector<2x32xf32>
    %78 = arith.mulf %69, %39 : vector<2x32xf32>
    %79 = arith.addf %77, %78 : vector<2x32xf32>
    %80 = arith.truncf %79 : vector<2x32xf32> to vector<2x32xbf16>
    %cst_19 = arith.constant dense<0.000000e+00> : vector<2x256xf32>
    %81 = tpu.matmul %80, %1, %cst_19 {dimension_numbers = #tpu.dot_dimension_numbers<[1], [0], [0], [1], [0, 0, 1, 1], [], []>} : vector<2x32xbf16>, vector<32x256xbf16>, vector<2x256xf32> -> vector<2x256xf32>
    %82 = vector.broadcast %2 : vector<1x256xf32> to vector<2x256xf32>
    %83 = arith.addf %81, %82 : vector<2x256xf32>
    %84 = vector.extract_strided_slice %83 {offsets = [0, 0], sizes = [2, 128], strides = [1, 1]} : vector<2x256xf32> to vector<2x128xf32>
    %85 = vector.extract_strided_slice %83 {offsets = [0, 128], sizes = [2, 96], strides = [1, 1]} : vector<2x256xf32> to vector<2x96xf32>
    %c0_20 = arith.constant 0 : index
    %c128 = arith.constant 128 : index
    %86 = vector.load %arg4[%c0_20, %c128] : memref<2x1024xf32, #tpu.memory_space<vmem>>, vector<2x128xf32>
    tpu.vector_store %arg4[%c0_20, %c128], %84 {strides = array<i32>} : memref<2x1024xf32, #tpu.memory_space<vmem>>, vector<2x128xf32>,
    %cst_21 = arith.constant dense<0xFF800000> : vector<2xf32>
    %87 = vector.multi_reduction <maximumf>, %84, %cst_21 [1] : vector<2x128xf32> to vector<2xf32>
    %88 = vector.shape_cast %87 : vector<2xf32> to vector<2x1xf32>
    %89 = vector.broadcast %88 : vector<2x1xf32> to vector<2x128xf32>
    %90 = arith.cmpf oeq, %84, %89 : vector<2x128xf32>
    %c128_i32_22 = arith.constant 128 : i32
    %91 = vector.broadcast %c128_i32_22 : i32 to vector<2x128xi32>
    %92 = arith.select %90, %0, %91 : vector<2x128xi1>, vector<2x128xi32>
    %cst_23 = arith.constant dense<2147483647> : vector<2xi32>
    %93 = vector.multi_reduction <minsi>, %92, %cst_23 [1] : vector<2x128xi32> to vector<2xi32>
    %94 = vector.shape_cast %93 : vector<2xi32> to vector<2x1xi32>
    %95 = vector.broadcast %94 : vector<2x1xi32> to vector<2x128xi32>
    %96 = arith.cmpi eq, %0, %95 : vector<2x128xi32>
    %97 = arith.extui %96 : vector<2x128xi1> to vector<2x128xi32>
    %98 = arith.sitofp %97 : vector<2x128xi32> to vector<2x128xf32>
    %cst_24 = arith.constant dense<0.000000e+00> : vector<2x96xf32>
    %99 = tpu.matmul %98, %3, %cst_24 {dimension_numbers = #tpu.dot_dimension_numbers<[1], [0], [0], [1], [0, 0, 1, 1], [], []>} : vector<2x128xf32>, vector<128x96xf32>, vector<2x96xf32> -> vector<2x96xf32>
    %100 = vector.extract_strided_slice %99 {offsets = [0, 0], sizes = [2, 64], strides = [1, 1]} : vector<2x96xf32> to vector<2x64xf32>
    %101 = vector.extract_strided_slice %85 {offsets = [0, 0], sizes = [2, 64], strides = [1, 1]} : vector<2x96xf32> to vector<2x64xf32>
    %102 = arith.addf %100, %101 : vector<2x64xf32>
    %103 = arith.negf %102 : vector<2x64xf32>
    %104 = math.exp %103 : vector<2x64xf32>
    %cst_25 = arith.constant 1.000000e+00 : f32
    %105 = vector.broadcast %cst_25 : f32 to vector<2x64xf32>
    %106 = arith.addf %105, %104 : vector<2x64xf32>
    %107 = arith.divf %105, %106 : vector<2x64xf32>
    %108 = vector.extract_strided_slice %107 {offsets = [0, 0], sizes = [2, 32], strides = [1, 1]} : vector<2x64xf32> to vector<2x32xf32>
    %109 = vector.extract_strided_slice %107 {offsets = [0, 32], sizes = [2, 32], strides = [1, 1]} : vector<2x64xf32> to vector<2x32xf32>
    %110 = vector.extract_strided_slice %99 {offsets = [0, 64], sizes = [2, 32], strides = [1, 1]} : vector<2x96xf32> to vector<2x32xf32>
    %111 = vector.extract_strided_slice %85 {offsets = [0, 64], sizes = [2, 32], strides = [1, 1]} : vector<2x96xf32> to vector<2x32xf32>
    %112 = arith.mulf %108, %111 : vector<2x32xf32>
    %113 = arith.addf %110, %112 : vector<2x32xf32>
    %114 = math.tanh %113 : vector<2x32xf32>
    %cst_26 = arith.constant 1.000000e+00 : f32
    %115 = vector.broadcast %cst_26 : f32 to vector<2x32xf32>
    %116 = arith.subf %115, %109 : vector<2x32xf32>
    %117 = arith.mulf %116, %114 : vector<2x32xf32>
    %118 = arith.mulf %109, %79 : vector<2x32xf32>
    %119 = arith.addf %117, %118 : vector<2x32xf32>
    %120 = arith.truncf %119 : vector<2x32xf32> to vector<2x32xbf16>
    %cst_27 = arith.constant dense<0.000000e+00> : vector<2x256xf32>
    %121 = tpu.matmul %120, %1, %cst_27 {dimension_numbers = #tpu.dot_dimension_numbers<[1], [0], [0], [1], [0, 0, 1, 1], [], []>} : vector<2x32xbf16>, vector<32x256xbf16>, vector<2x256xf32> -> vector<2x256xf32>
    %122 = vector.broadcast %2 : vector<1x256xf32> to vector<2x256xf32>
    %123 = arith.addf %121, %122 : vector<2x256xf32>
    %124 = vector.extract_strided_slice %123 {offsets = [0, 0], sizes = [2, 128], strides = [1, 1]} : vector<2x256xf32> to vector<2x128xf32>
    %125 = vector.extract_strided_slice %123 {offsets = [0, 128], sizes = [2, 96], strides = [1, 1]} : vector<2x256xf32> to vector<2x96xf32>
    %c0_28 = arith.constant 0 : index
    %c256 = arith.constant 256 : index
    %126 = vector.load %arg4[%c0_28, %c256] : memref<2x1024xf32, #tpu.memory_space<vmem>>, vector<2x128xf32>
    tpu.vector_store %arg4[%c0_28, %c256], %124 {strides = array<i32>} : memref<2x1024xf32, #tpu.memory_space<vmem>>, vector<2x128xf32>,
    %cst_29 = arith.constant dense<0xFF800000> : vector<2xf32>
    %127 = vector.multi_reduction <maximumf>, %124, %cst_29 [1] : vector<2x128xf32> to vector<2xf32>
    %128 = vector.shape_cast %127 : vector<2xf32> to vector<2x1xf32>
    %129 = vector.broadcast %128 : vector<2x1xf32> to vector<2x128xf32>
    %130 = arith.cmpf oeq, %124, %129 : vector<2x128xf32>
    %c128_i32_30 = arith.constant 128 : i32
    %131 = vector.broadcast %c128_i32_30 : i32 to vector<2x128xi32>
    %132 = arith.select %130, %0, %131 : vector<2x128xi1>, vector<2x128xi32>
    %cst_31 = arith.constant dense<2147483647> : vector<2xi32>
    %133 = vector.multi_reduction <minsi>, %132, %cst_31 [1] : vector<2x128xi32> to vector<2xi32>
    %134 = vector.shape_cast %133 : vector<2xi32> to vector<2x1xi32>
    %135 = vector.broadcast %134 : vector<2x1xi32> to vector<2x128xi32>
    %136 = arith.cmpi eq, %0, %135 : vector<2x128xi32>
    %137 = arith.extui %136 : vector<2x128xi1> to vector<2x128xi32>
    %138 = arith.sitofp %137 : vector<2x128xi32> to vector<2x128xf32>
    %cst_32 = arith.constant dense<0.000000e+00> : vector<2x96xf32>
    %139 = tpu.matmul %138, %3, %cst_32 {dimension_numbers = #tpu.dot_dimension_numbers<[1], [0], [0], [1], [0, 0, 1, 1], [], []>} : vector<2x128xf32>, vector<128x96xf32>, vector<2x96xf32> -> vector<2x96xf32>
    %140 = vector.extract_strided_slice %139 {offsets = [0, 0], sizes = [2, 64], strides = [1, 1]} : vector<2x96xf32> to vector<2x64xf32>
    %141 = vector.extract_strided_slice %125 {offsets = [0, 0], sizes = [2, 64], strides = [1, 1]} : vector<2x96xf32> to vector<2x64xf32>
    %142 = arith.addf %140, %141 : vector<2x64xf32>
    %143 = arith.negf %142 : vector<2x64xf32>
    %144 = math.exp %143 : vector<2x64xf32>
    %cst_33 = arith.constant 1.000000e+00 : f32
    %145 = vector.broadcast %cst_33 : f32 to vector<2x64xf32>
    %146 = arith.addf %145, %144 : vector<2x64xf32>
    %147 = arith.divf %145, %146 : vector<2x64xf32>
    %148 = vector.extract_strided_slice %147 {offsets = [0, 0], sizes = [2, 32], strides = [1, 1]} : vector<2x64xf32> to vector<2x32xf32>
    %149 = vector.extract_strided_slice %147 {offsets = [0, 32], sizes = [2, 32], strides = [1, 1]} : vector<2x64xf32> to vector<2x32xf32>
    %150 = vector.extract_strided_slice %139 {offsets = [0, 64], sizes = [2, 32], strides = [1, 1]} : vector<2x96xf32> to vector<2x32xf32>
    %151 = vector.extract_strided_slice %125 {offsets = [0, 64], sizes = [2, 32], strides = [1, 1]} : vector<2x96xf32> to vector<2x32xf32>
    %152 = arith.mulf %148, %151 : vector<2x32xf32>
    %153 = arith.addf %150, %152 : vector<2x32xf32>
    %154 = math.tanh %153 : vector<2x32xf32>
    %cst_34 = arith.constant 1.000000e+00 : f32
    %155 = vector.broadcast %cst_34 : f32 to vector<2x32xf32>
    %156 = arith.subf %155, %149 : vector<2x32xf32>
    %157 = arith.mulf %156, %154 : vector<2x32xf32>
    %158 = arith.mulf %149, %119 : vector<2x32xf32>
    %159 = arith.addf %157, %158 : vector<2x32xf32>
    %160 = arith.truncf %159 : vector<2x32xf32> to vector<2x32xbf16>
    %cst_35 = arith.constant dense<0.000000e+00> : vector<2x256xf32>
    %161 = tpu.matmul %160, %1, %cst_35 {dimension_numbers = #tpu.dot_dimension_numbers<[1], [0], [0], [1], [0, 0, 1, 1], [], []>} : vector<2x32xbf16>, vector<32x256xbf16>, vector<2x256xf32> -> vector<2x256xf32>
    %162 = vector.broadcast %2 : vector<1x256xf32> to vector<2x256xf32>
    %163 = arith.addf %161, %162 : vector<2x256xf32>
    %164 = vector.extract_strided_slice %163 {offsets = [0, 0], sizes = [2, 128], strides = [1, 1]} : vector<2x256xf32> to vector<2x128xf32>
    %165 = vector.extract_strided_slice %163 {offsets = [0, 128], sizes = [2, 96], strides = [1, 1]} : vector<2x256xf32> to vector<2x96xf32>
    %c0_36 = arith.constant 0 : index
    %c384 = arith.constant 384 : index
    %166 = vector.load %arg4[%c0_36, %c384] : memref<2x1024xf32, #tpu.memory_space<vmem>>, vector<2x128xf32>
    tpu.vector_store %arg4[%c0_36, %c384], %164 {strides = array<i32>} : memref<2x1024xf32, #tpu.memory_space<vmem>>, vector<2x128xf32>,
    %cst_37 = arith.constant dense<0xFF800000> : vector<2xf32>
    %167 = vector.multi_reduction <maximumf>, %164, %cst_37 [1] : vector<2x128xf32> to vector<2xf32>
    %168 = vector.shape_cast %167 : vector<2xf32> to vector<2x1xf32>
    %169 = vector.broadcast %168 : vector<2x1xf32> to vector<2x128xf32>
    %170 = arith.cmpf oeq, %164, %169 : vector<2x128xf32>
    %c128_i32_38 = arith.constant 128 : i32
    %171 = vector.broadcast %c128_i32_38 : i32 to vector<2x128xi32>
    %172 = arith.select %170, %0, %171 : vector<2x128xi1>, vector<2x128xi32>
    %cst_39 = arith.constant dense<2147483647> : vector<2xi32>
    %173 = vector.multi_reduction <minsi>, %172, %cst_39 [1] : vector<2x128xi32> to vector<2xi32>
    %174 = vector.shape_cast %173 : vector<2xi32> to vector<2x1xi32>
    %175 = vector.broadcast %174 : vector<2x1xi32> to vector<2x128xi32>
    %176 = arith.cmpi eq, %0, %175 : vector<2x128xi32>
    %177 = arith.extui %176 : vector<2x128xi1> to vector<2x128xi32>
    %178 = arith.sitofp %177 : vector<2x128xi32> to vector<2x128xf32>
    %cst_40 = arith.constant dense<0.000000e+00> : vector<2x96xf32>
    %179 = tpu.matmul %178, %3, %cst_40 {dimension_numbers = #tpu.dot_dimension_numbers<[1], [0], [0], [1], [0, 0, 1, 1], [], []>} : vector<2x128xf32>, vector<128x96xf32>, vector<2x96xf32> -> vector<2x96xf32>
    %180 = vector.extract_strided_slice %179 {offsets = [0, 0], sizes = [2, 64], strides = [1, 1]} : vector<2x96xf32> to vector<2x64xf32>
    %181 = vector.extract_strided_slice %165 {offsets = [0, 0], sizes = [2, 64], strides = [1, 1]} : vector<2x96xf32> to vector<2x64xf32>
    %182 = arith.addf %180, %181 : vector<2x64xf32>
    %183 = arith.negf %182 : vector<2x64xf32>
    %184 = math.exp %183 : vector<2x64xf32>
    %cst_41 = arith.constant 1.000000e+00 : f32
    %185 = vector.broadcast %cst_41 : f32 to vector<2x64xf32>
    %186 = arith.addf %185, %184 : vector<2x64xf32>
    %187 = arith.divf %185, %186 : vector<2x64xf32>
    %188 = vector.extract_strided_slice %187 {offsets = [0, 0], sizes = [2, 32], strides = [1, 1]} : vector<2x64xf32> to vector<2x32xf32>
    %189 = vector.extract_strided_slice %187 {offsets = [0, 32], sizes = [2, 32], strides = [1, 1]} : vector<2x64xf32> to vector<2x32xf32>
    %190 = vector.extract_strided_slice %179 {offsets = [0, 64], sizes = [2, 32], strides = [1, 1]} : vector<2x96xf32> to vector<2x32xf32>
    %191 = vector.extract_strided_slice %165 {offsets = [0, 64], sizes = [2, 32], strides = [1, 1]} : vector<2x96xf32> to vector<2x32xf32>
    %192 = arith.mulf %188, %191 : vector<2x32xf32>
    %193 = arith.addf %190, %192 : vector<2x32xf32>
    %194 = math.tanh %193 : vector<2x32xf32>
    %cst_42 = arith.constant 1.000000e+00 : f32
    %195 = vector.broadcast %cst_42 : f32 to vector<2x32xf32>
    %196 = arith.subf %195, %189 : vector<2x32xf32>
    %197 = arith.mulf %196, %194 : vector<2x32xf32>
    %198 = arith.mulf %189, %159 : vector<2x32xf32>
    %199 = arith.addf %197, %198 : vector<2x32xf32>
    %200 = arith.truncf %199 : vector<2x32xf32> to vector<2x32xbf16>
    %cst_43 = arith.constant dense<0.000000e+00> : vector<2x256xf32>
    %201 = tpu.matmul %200, %1, %cst_43 {dimension_numbers = #tpu.dot_dimension_numbers<[1], [0], [0], [1], [0, 0, 1, 1], [], []>} : vector<2x32xbf16>, vector<32x256xbf16>, vector<2x256xf32> -> vector<2x256xf32>
    %202 = vector.broadcast %2 : vector<1x256xf32> to vector<2x256xf32>
    %203 = arith.addf %201, %202 : vector<2x256xf32>
    %204 = vector.extract_strided_slice %203 {offsets = [0, 0], sizes = [2, 128], strides = [1, 1]} : vector<2x256xf32> to vector<2x128xf32>
    %205 = vector.extract_strided_slice %203 {offsets = [0, 128], sizes = [2, 96], strides = [1, 1]} : vector<2x256xf32> to vector<2x96xf32>
    %c0_44 = arith.constant 0 : index
    %c512 = arith.constant 512 : index
    %206 = vector.load %arg4[%c0_44, %c512] : memref<2x1024xf32, #tpu.memory_space<vmem>>, vector<2x128xf32>
    tpu.vector_store %arg4[%c0_44, %c512], %204 {strides = array<i32>} : memref<2x1024xf32, #tpu.memory_space<vmem>>, vector<2x128xf32>,
    %cst_45 = arith.constant dense<0xFF800000> : vector<2xf32>
    %207 = vector.multi_reduction <maximumf>, %204, %cst_45 [1] : vector<2x128xf32> to vector<2xf32>
    %208 = vector.shape_cast %207 : vector<2xf32> to vector<2x1xf32>
    %209 = vector.broadcast %208 : vector<2x1xf32> to vector<2x128xf32>
    %210 = arith.cmpf oeq, %204, %209 : vector<2x128xf32>
    %c128_i32_46 = arith.constant 128 : i32
    %211 = vector.broadcast %c128_i32_46 : i32 to vector<2x128xi32>
    %212 = arith.select %210, %0, %211 : vector<2x128xi1>, vector<2x128xi32>
    %cst_47 = arith.constant dense<2147483647> : vector<2xi32>
    %213 = vector.multi_reduction <minsi>, %212, %cst_47 [1] : vector<2x128xi32> to vector<2xi32>
    %214 = vector.shape_cast %213 : vector<2xi32> to vector<2x1xi32>
    %215 = vector.broadcast %214 : vector<2x1xi32> to vector<2x128xi32>
    %216 = arith.cmpi eq, %0, %215 : vector<2x128xi32>
    %217 = arith.extui %216 : vector<2x128xi1> to vector<2x128xi32>
    %218 = arith.sitofp %217 : vector<2x128xi32> to vector<2x128xf32>
    %cst_48 = arith.constant dense<0.000000e+00> : vector<2x96xf32>
    %219 = tpu.matmul %218, %3, %cst_48 {dimension_numbers = #tpu.dot_dimension_numbers<[1], [0], [0], [1], [0, 0, 1, 1], [], []>} : vector<2x128xf32>, vector<128x96xf32>, vector<2x96xf32> -> vector<2x96xf32>
    %220 = vector.extract_strided_slice %219 {offsets = [0, 0], sizes = [2, 64], strides = [1, 1]} : vector<2x96xf32> to vector<2x64xf32>
    %221 = vector.extract_strided_slice %205 {offsets = [0, 0], sizes = [2, 64], strides = [1, 1]} : vector<2x96xf32> to vector<2x64xf32>
    %222 = arith.addf %220, %221 : vector<2x64xf32>
    %223 = arith.negf %222 : vector<2x64xf32>
    %224 = math.exp %223 : vector<2x64xf32>
    %cst_49 = arith.constant 1.000000e+00 : f32
    %225 = vector.broadcast %cst_49 : f32 to vector<2x64xf32>
    %226 = arith.addf %225, %224 : vector<2x64xf32>
    %227 = arith.divf %225, %226 : vector<2x64xf32>
    %228 = vector.extract_strided_slice %227 {offsets = [0, 0], sizes = [2, 32], strides = [1, 1]} : vector<2x64xf32> to vector<2x32xf32>
    %229 = vector.extract_strided_slice %227 {offsets = [0, 32], sizes = [2, 32], strides = [1, 1]} : vector<2x64xf32> to vector<2x32xf32>
    %230 = vector.extract_strided_slice %219 {offsets = [0, 64], sizes = [2, 32], strides = [1, 1]} : vector<2x96xf32> to vector<2x32xf32>
    %231 = vector.extract_strided_slice %205 {offsets = [0, 64], sizes = [2, 32], strides = [1, 1]} : vector<2x96xf32> to vector<2x32xf32>
    %232 = arith.mulf %228, %231 : vector<2x32xf32>
    %233 = arith.addf %230, %232 : vector<2x32xf32>
    %234 = math.tanh %233 : vector<2x32xf32>
    %cst_50 = arith.constant 1.000000e+00 : f32
    %235 = vector.broadcast %cst_50 : f32 to vector<2x32xf32>
    %236 = arith.subf %235, %229 : vector<2x32xf32>
    %237 = arith.mulf %236, %234 : vector<2x32xf32>
    %238 = arith.mulf %229, %199 : vector<2x32xf32>
    %239 = arith.addf %237, %238 : vector<2x32xf32>
    %240 = arith.truncf %239 : vector<2x32xf32> to vector<2x32xbf16>
    %cst_51 = arith.constant dense<0.000000e+00> : vector<2x256xf32>
    %241 = tpu.matmul %240, %1, %cst_51 {dimension_numbers = #tpu.dot_dimension_numbers<[1], [0], [0], [1], [0, 0, 1, 1], [], []>} : vector<2x32xbf16>, vector<32x256xbf16>, vector<2x256xf32> -> vector<2x256xf32>
    %242 = vector.broadcast %2 : vector<1x256xf32> to vector<2x256xf32>
    %243 = arith.addf %241, %242 : vector<2x256xf32>
    %244 = vector.extract_strided_slice %243 {offsets = [0, 0], sizes = [2, 128], strides = [1, 1]} : vector<2x256xf32> to vector<2x128xf32>
    %245 = vector.extract_strided_slice %243 {offsets = [0, 128], sizes = [2, 96], strides = [1, 1]} : vector<2x256xf32> to vector<2x96xf32>
    %c0_52 = arith.constant 0 : index
    %c640 = arith.constant 640 : index
    %246 = vector.load %arg4[%c0_52, %c640] : memref<2x1024xf32, #tpu.memory_space<vmem>>, vector<2x128xf32>
    tpu.vector_store %arg4[%c0_52, %c640], %244 {strides = array<i32>} : memref<2x1024xf32, #tpu.memory_space<vmem>>, vector<2x128xf32>,
    %cst_53 = arith.constant dense<0xFF800000> : vector<2xf32>
    %247 = vector.multi_reduction <maximumf>, %244, %cst_53 [1] : vector<2x128xf32> to vector<2xf32>
    %248 = vector.shape_cast %247 : vector<2xf32> to vector<2x1xf32>
    %249 = vector.broadcast %248 : vector<2x1xf32> to vector<2x128xf32>
    %250 = arith.cmpf oeq, %244, %249 : vector<2x128xf32>
    %c128_i32_54 = arith.constant 128 : i32
    %251 = vector.broadcast %c128_i32_54 : i32 to vector<2x128xi32>
    %252 = arith.select %250, %0, %251 : vector<2x128xi1>, vector<2x128xi32>
    %cst_55 = arith.constant dense<2147483647> : vector<2xi32>
    %253 = vector.multi_reduction <minsi>, %252, %cst_55 [1] : vector<2x128xi32> to vector<2xi32>
    %254 = vector.shape_cast %253 : vector<2xi32> to vector<2x1xi32>
    %255 = vector.broadcast %254 : vector<2x1xi32> to vector<2x128xi32>
    %256 = arith.cmpi eq, %0, %255 : vector<2x128xi32>
    %257 = arith.extui %256 : vector<2x128xi1> to vector<2x128xi32>
    %258 = arith.sitofp %257 : vector<2x128xi32> to vector<2x128xf32>
    %cst_56 = arith.constant dense<0.000000e+00> : vector<2x96xf32>
    %259 = tpu.matmul %258, %3, %cst_56 {dimension_numbers = #tpu.dot_dimension_numbers<[1], [0], [0], [1], [0, 0, 1, 1], [], []>} : vector<2x128xf32>, vector<128x96xf32>, vector<2x96xf32> -> vector<2x96xf32>
    %260 = vector.extract_strided_slice %259 {offsets = [0, 0], sizes = [2, 64], strides = [1, 1]} : vector<2x96xf32> to vector<2x64xf32>
    %261 = vector.extract_strided_slice %245 {offsets = [0, 0], sizes = [2, 64], strides = [1, 1]} : vector<2x96xf32> to vector<2x64xf32>
    %262 = arith.addf %260, %261 : vector<2x64xf32>
    %263 = arith.negf %262 : vector<2x64xf32>
    %264 = math.exp %263 : vector<2x64xf32>
    %cst_57 = arith.constant 1.000000e+00 : f32
    %265 = vector.broadcast %cst_57 : f32 to vector<2x64xf32>
    %266 = arith.addf %265, %264 : vector<2x64xf32>
    %267 = arith.divf %265, %266 : vector<2x64xf32>
    %268 = vector.extract_strided_slice %267 {offsets = [0, 0], sizes = [2, 32], strides = [1, 1]} : vector<2x64xf32> to vector<2x32xf32>
    %269 = vector.extract_strided_slice %267 {offsets = [0, 32], sizes = [2, 32], strides = [1, 1]} : vector<2x64xf32> to vector<2x32xf32>
    %270 = vector.extract_strided_slice %259 {offsets = [0, 64], sizes = [2, 32], strides = [1, 1]} : vector<2x96xf32> to vector<2x32xf32>
    %271 = vector.extract_strided_slice %245 {offsets = [0, 64], sizes = [2, 32], strides = [1, 1]} : vector<2x96xf32> to vector<2x32xf32>
    %272 = arith.mulf %268, %271 : vector<2x32xf32>
    %273 = arith.addf %270, %272 : vector<2x32xf32>
    %274 = math.tanh %273 : vector<2x32xf32>
    %cst_58 = arith.constant 1.000000e+00 : f32
    %275 = vector.broadcast %cst_58 : f32 to vector<2x32xf32>
    %276 = arith.subf %275, %269 : vector<2x32xf32>
    %277 = arith.mulf %276, %274 : vector<2x32xf32>
    %278 = arith.mulf %269, %239 : vector<2x32xf32>
    %279 = arith.addf %277, %278 : vector<2x32xf32>
    %280 = arith.truncf %279 : vector<2x32xf32> to vector<2x32xbf16>
    %cst_59 = arith.constant dense<0.000000e+00> : vector<2x256xf32>
    %281 = tpu.matmul %280, %1, %cst_59 {dimension_numbers = #tpu.dot_dimension_numbers<[1], [0], [0], [1], [0, 0, 1, 1], [], []>} : vector<2x32xbf16>, vector<32x256xbf16>, vector<2x256xf32> -> vector<2x256xf32>
    %282 = vector.broadcast %2 : vector<1x256xf32> to vector<2x256xf32>
    %283 = arith.addf %281, %282 : vector<2x256xf32>
    %284 = vector.extract_strided_slice %283 {offsets = [0, 0], sizes = [2, 128], strides = [1, 1]} : vector<2x256xf32> to vector<2x128xf32>
    %285 = vector.extract_strided_slice %283 {offsets = [0, 128], sizes = [2, 96], strides = [1, 1]} : vector<2x256xf32> to vector<2x96xf32>
    %c0_60 = arith.constant 0 : index
    %c768 = arith.constant 768 : index
    %286 = vector.load %arg4[%c0_60, %c768] : memref<2x1024xf32, #tpu.memory_space<vmem>>, vector<2x128xf32>
    tpu.vector_store %arg4[%c0_60, %c768], %284 {strides = array<i32>} : memref<2x1024xf32, #tpu.memory_space<vmem>>, vector<2x128xf32>,
    %cst_61 = arith.constant dense<0xFF800000> : vector<2xf32>
    %287 = vector.multi_reduction <maximumf>, %284, %cst_61 [1] : vector<2x128xf32> to vector<2xf32>
    %288 = vector.shape_cast %287 : vector<2xf32> to vector<2x1xf32>
    %289 = vector.broadcast %288 : vector<2x1xf32> to vector<2x128xf32>
    %290 = arith.cmpf oeq, %284, %289 : vector<2x128xf32>
    %c128_i32_62 = arith.constant 128 : i32
    %291 = vector.broadcast %c128_i32_62 : i32 to vector<2x128xi32>
    %292 = arith.select %290, %0, %291 : vector<2x128xi1>, vector<2x128xi32>
    %cst_63 = arith.constant dense<2147483647> : vector<2xi32>
    %293 = vector.multi_reduction <minsi>, %292, %cst_63 [1] : vector<2x128xi32> to vector<2xi32>
    %294 = vector.shape_cast %293 : vector<2xi32> to vector<2x1xi32>
    %295 = vector.broadcast %294 : vector<2x1xi32> to vector<2x128xi32>
    %296 = arith.cmpi eq, %0, %295 : vector<2x128xi32>
    %297 = arith.extui %296 : vector<2x128xi1> to vector<2x128xi32>
    %298 = arith.sitofp %297 : vector<2x128xi32> to vector<2x128xf32>
    %cst_64 = arith.constant dense<0.000000e+00> : vector<2x96xf32>
    %299 = tpu.matmul %298, %3, %cst_64 {dimension_numbers = #tpu.dot_dimension_numbers<[1], [0], [0], [1], [0, 0, 1, 1], [], []>} : vector<2x128xf32>, vector<128x96xf32>, vector<2x96xf32> -> vector<2x96xf32>
    %300 = vector.extract_strided_slice %299 {offsets = [0, 0], sizes = [2, 64], strides = [1, 1]} : vector<2x96xf32> to vector<2x64xf32>
    %301 = vector.extract_strided_slice %285 {offsets = [0, 0], sizes = [2, 64], strides = [1, 1]} : vector<2x96xf32> to vector<2x64xf32>
    %302 = arith.addf %300, %301 : vector<2x64xf32>
    %303 = arith.negf %302 : vector<2x64xf32>
    %304 = math.exp %303 : vector<2x64xf32>
    %cst_65 = arith.constant 1.000000e+00 : f32
    %305 = vector.broadcast %cst_65 : f32 to vector<2x64xf32>
    %306 = arith.addf %305, %304 : vector<2x64xf32>
    %307 = arith.divf %305, %306 : vector<2x64xf32>
    %308 = vector.extract_strided_slice %307 {offsets = [0, 0], sizes = [2, 32], strides = [1, 1]} : vector<2x64xf32> to vector<2x32xf32>
    %309 = vector.extract_strided_slice %307 {offsets = [0, 32], sizes = [2, 32], strides = [1, 1]} : vector<2x64xf32> to vector<2x32xf32>
    %310 = vector.extract_strided_slice %299 {offsets = [0, 64], sizes = [2, 32], strides = [1, 1]} : vector<2x96xf32> to vector<2x32xf32>
    %311 = vector.extract_strided_slice %285 {offsets = [0, 64], sizes = [2, 32], strides = [1, 1]} : vector<2x96xf32> to vector<2x32xf32>
    %312 = arith.mulf %308, %311 : vector<2x32xf32>
    %313 = arith.addf %310, %312 : vector<2x32xf32>
    %314 = math.tanh %313 : vector<2x32xf32>
    %cst_66 = arith.constant 1.000000e+00 : f32
    %315 = vector.broadcast %cst_66 : f32 to vector<2x32xf32>
    %316 = arith.subf %315, %309 : vector<2x32xf32>
    %317 = arith.mulf %316, %314 : vector<2x32xf32>
    %318 = arith.mulf %309, %279 : vector<2x32xf32>
    %319 = arith.addf %317, %318 : vector<2x32xf32>
    %320 = arith.truncf %319 : vector<2x32xf32> to vector<2x32xbf16>
    %cst_67 = arith.constant dense<0.000000e+00> : vector<2x256xf32>
    %321 = tpu.matmul %320, %1, %cst_67 {dimension_numbers = #tpu.dot_dimension_numbers<[1], [0], [0], [1], [0, 0, 1, 1], [], []>} : vector<2x32xbf16>, vector<32x256xbf16>, vector<2x256xf32> -> vector<2x256xf32>
    %322 = vector.broadcast %2 : vector<1x256xf32> to vector<2x256xf32>
    %323 = arith.addf %321, %322 : vector<2x256xf32>
    %324 = vector.extract_strided_slice %323 {offsets = [0, 0], sizes = [2, 128], strides = [1, 1]} : vector<2x256xf32> to vector<2x128xf32>
    %c0_68 = arith.constant 0 : index
    %c896 = arith.constant 896 : index
    %325 = vector.load %arg4[%c0_68, %c896] : memref<2x1024xf32, #tpu.memory_space<vmem>>, vector<2x128xf32>
    tpu.vector_store %arg4[%c0_68, %c896], %324 {strides = array<i32>} : memref<2x1024xf32, #tpu.memory_space<vmem>>, vector<2x128xf32>,
    return
  }
}

</mosaic_0001>

<bundles_post_ra>
// kernel: tpu_custom_call.1
= control target key start
LH: loop header
LB: loop body
LE: loop exit
PB: predicated region body
PF: predicated region fallthrough
CT: control target
= control target key end

     0   :  { %v2245_v2 = vmov 0   ;;  %s2729_s0 = inlined_call_operand.vmem [shape: f32[2,32], index: 0, kind: input, shape index: {}]   ;;  %s2730_s1 = inlined_call_operand.vmem [shape: bf16[32,256], index: 1, kind: input, shape index: {}]   ;;  %s2731_s2 = inlined_call_operand.vmem [shape: f32[128,96], index: 2, kind: input, shape index: {}]   ;;  %s2732_s3 = inlined_call_operand.vmem [shape: f32[1,256], index: 3, kind: input, shape index: {}]   ;;  %s2733_s4 = inlined_call_operand.hbm [shape: f32[2,1024], index: 4, kind: output, shape index: {}]  }
   0x1   :  { %v2282_v0 = vld [vmem:[%s2730_s1 + $0x4] ss:$8 sps:$4 sm:$0xff]   ;;  %v2287_v1 = vld [vmem:[%s2730_s1] ss:$8 sps:$4 sm:$0xff]   ;;  %111 = vmatprep.mubr.bf16.mxu0 %v2245_v2  ;;  %158 = vmatprep.mubr.bf16.mxu1 %v2245_v2  ;;  %v2295_v3 = vld [vmem:[%s2730_s1 + $0x14] ss:$8 sps:$4 sm:$0xff]  }
   0x2   :  { %79 = vmatprep.subr.bf16.mxu0 %v2282_v0  ;;  %126 = vmatprep.subr.bf16.mxu1 %v2282_v0  ;;  %v2302_v4 = vld [vmem:[%s2730_s1 + $0x10] ss:$8 sps:$4 sm:$0xff]   ;;  %v42_v5 = vld [vmem:[%s2729_s0] sm:$0x3] }
   0x3   :  { %80 = vmatpush1.bf16.msra.mxu0 %v2287_v1  ;;  %127 = vmatpush1.bf16.msra.mxu1 %v2287_v1 }
   0x4   :  { %9 = vsyncpa [#allocation3], 0  ;;  %81 = vmatprep.subr.bf16.mxu0 %v2295_v3  ;;  %128 = vmatprep.subr.bf16.mxu1 %v2295_v3  ;;  %v43_v6 = vpack.c.bf16 %v42_v5, %v42_v5  ;;  %vm75_vm0 = vcmask 261120   ;;  %v26_v7 = vld [vmem:[%s2731_s2] sm:$0xff]  ;;  %v27_v8 = vld [vmem:[%s2731_s2 + $0x8] sm:$0xff]  ;;  %v2246_v10 = vmov 0.0|0.0   ;;  %v19_v29 = vlaneseq }
   0x5   :  { %v28_v9 = vld [vmem:[%s2731_s2 + $0x10] sm:$0xff]  ;;  %v2324_v11 = vpack.c.bf16 %v27_v8, %v26_v7  ;;  %v29_v12 = vld [vmem:[%s2731_s2 + $0x18] sm:$0xff]  ;;  %v30_v14 = vld [vmem:[%s2731_s2 + $0x20] sm:$0xff]  ;;  %vm2247_vm2 = vmmov 0   ;;  %v2248_v36 = vmov 0.0   ;;  %v2249_v38 = vmov 1.0  }
   0x6   :  { %v2330_v13 = vpack.c.bf16 %v29_v12, %v28_v9  ;;  %v31_v15 = vld [vmem:[%s2731_s2 + $0x28] sm:$0xff]  ;;  %v32_v17 = vld [vmem:[%s2731_s2 + $0x30] sm:$0xff]  ;;  %v33_v18 = vld [vmem:[%s2731_s2 + $0x38] sm:$0xff]  ;;  %v2385_v30 = vand.u32 127, %v19_v29  ;;  %v2387_v31 = vshrl.u32 %v19_v29, 7  ;;  %s2252_s5 = smov 96  }
   0x7   :  { %82 = vmatpush1.bf16.msra.mxu0 %v2302_v4  ;;  %129 = vmatpush1.bf16.msra.mxu1 %v2302_v4  ;;  %v2340_v16 = vpack.c.bf16 %v31_v15, %v30_v14  ;;  %v2350_v19 = vpack.c.bf16 %v33_v18, %v32_v17  ;;  %v34_v20 = vld [vmem:[%s2731_s2 + $0x40] sm:$0xff]  ;;  %v35_v21 = vld [vmem:[%s2731_s2 + $0x48] sm:$0xff]  ;;  %v36_v23 = vld [vmem:[%s2731_s2 + $0x50] sm:$0xff]  ;;  %vm318_vm3 = vcmask 1041408  }
   0x8   :  { %276 = vmatprep.subr.bf16.mxu1 %v2282_v0  ;;  %1962 = vmatprep.subr.bf16.mxu0 %v2246_v10  ;;  %v2360_v22 = vpack.c.bf16 %v35_v21, %v34_v20  ;;  %v37_v24 = vld [vmem:[%s2731_s2 + $0x58] sm:$0xff]  ;;  %v38_v26 = vld [vmem:[%s2731_s2 + $0x60] sm:$0xff]  ;;  %v39_v27 = vld [vmem:[%s2731_s2 + $0x68] sm:$0xff]  ;;  %vm166_vm1 = vcmp.eq.s32.totalorder %v2385_v30, 1  ;;  %v51_v35 = vsub.s32 1, %v2387_v31  ;;  %v47_v17 = vsub.s32 0, %v2387_v31 }
   0x9   :  { %v2370_v25 = vpack.c.bf16 %v37_v24, %v36_v23  ;;  %v2380_v28 = vpack.c.bf16 %v39_v27, %v38_v26  ;;  %v40_v32 = vld [vmem:[%s2731_s2 + $0x70] sm:$0xff]  ;;  %v41_v33 = vld [vmem:[%s2731_s2 + $0x78] sm:$0xff]  ;;  %v2406_v37 = vld [vmem:[%s2732_s3] sm:$0x3]  ;;  %s2250_s2 = smov 32   ;;  %s2251_s3 = smov 64  }
   0xa   :  { %1512 = vmatmul.mubr.msk.bf16.vlgmr.msra.gmra.mrb[0].mxu0 %vm75_vm0, %v43_v6  ;;  %v2395_v34 = vpack.c.bf16 %v41_v33, %v40_v32  ;;  %v2412_v39 = vrot.slane %v2406_v37, %v51_v35  ;;  %v2455_v18 = vrot.slane %v2406_v37, %v47_v17 }
   0xb   :  { %1964 = vmatpush3.bf16.msra.mxu0 %v2324_v11  ;;  %1714 = vmatprep.mubr.msk.f32.mxu0 %vm2247_vm2, %v2248_v36 }
   0xc   :  { %1965 = vmatprep.subr.bf16.mxu0 %v2246_v10 }
   0xf   :  { %1967 = vmatpush3.bf16.msra.mxu0 %v2330_v13 }
  0x10   :  { %1968 = vmatprep.subr.bf16.mxu0 %v2246_v10 }
  0x13   :  { %1970 = vmatpush3.bf16.msra.mxu0 %v2340_v16 }
  0x14   :  { %1971 = vmatprep.subr.bf16.mxu0 %v2246_v10 }
  0x17   :  { %1973 = vmatpush3.bf16.msra.mxu0 %v2350_v19 }
  0x18   :  { %1974 = vmatprep.subr.bf16.mxu0 %v2246_v10 }
  0x1b   :  { %1976 = vmatpush3.bf16.msra.mxu0 %v2360_v22 }
  0x1c   :  { %1977 = vmatprep.subr.bf16.mxu0 %v2246_v10 }
  0x1f   :  { %1979 = vmatpush3.bf16.msra.mxu0 %v2370_v25 }
  0x20   :  { %1980 = vmatprep.subr.bf16.mxu0 %v2246_v10 }
  0x23   :  { %1982 = vmatpush3.bf16.msra.mxu0 %v2380_v28 }
  0x24   :  { %1983 = vmatprep.subr.bf16.mxu0 %v2246_v10 }
  0x27   :  { %1985 = vmatpush3.bf16.msra.mxu0 %v2395_v34 }
  0x28   :  { %445 = vmatprep.subr.bf16.mxu0 %v2282_v0 }
  0x2a   :  { %1715 = vmatmul.mubr.msk.f32.vlgmr.msra.gmra.mrb[4].mxu0 %vm166_vm1, %v2249_v38 }
  0x2b   :  { %446 = vmatpush1.bf16.msra.mxu0 %v2287_v1  ;;  %477 = vmatprep.mubr.bf16.mxu0 %v2245_v2 }
  0x2c   :  { %447 = vmatprep.subr.bf16.mxu0 %v2295_v3 }
  0x2f   :  { %448 = vmatpush1.bf16.msra.mxu0 %v2302_v4 }
  0x30   :  { %2010 = vmatprep.subr.bf16.mxu0 %v2246_v10 }
  0xdd   :  { %v113_v40 = vpop.f32.mrb[0].mxu0 }
  0xde   :  { %v114_v41 = vpop.f32.mrb[1].mxu0 }
  0xdf   :  { %v115_v42 = vadd.f32 %v114_v41, %v2412_v39  ;;  %v116_v43 = vpop.f32.mrb[2].mxu0 }
  0xe0   :  { %v117_v44 = vpop.f32.mrb[3].mxu0 }
  0xe1   :  { %v119_v45 = vpack.c.bf16 %v115_v42, %v115_v42 }
  0xe3   :  { %121 = vrot.lane.b32.xlu0 %v119_v45, %s2250_s2 }
  0xfd   :  { %v235_v47 = vpop.f32.mrb[4].mxu0 }
  0xfe   :  { %v1716_v48 = vpop.f32.mrb[5].mxu0 }
 0x155   :  { %v122_v46 = vpop.permute.xlu0 %121 }
 0x156   :  { %1513 = vmatmul.mubr.msk.bf16.vlgmr.msra.gmra.mrb[0].mxu1 %vm75_vm0, %v122_v46 }
 0x157   :  { %277 = vmatpush1.bf16.msra.mxu1 %v2287_v1  ;;  %308 = vmatprep.mubr.bf16.mxu1 %v2245_v2 }
 0x158   :  { %278 = vmatprep.subr.bf16.mxu1 %v2295_v3 }
 0x15b   :  { %279 = vmatpush1.bf16.msra.mxu1 %v2302_v4 }
 0x15c   :  { %1986 = vmatprep.subr.bf16.mxu1 %v2246_v10 }
 0x229   :  { %v160_v49 = vpop.f32.mrb[0].mxu1 }
 0x22a   :  { %v161_v50 = vpop.f32.mrb[1].mxu1 }
 0x22b   :  { %v162_v51 = vadd.f32 %v161_v50, %v2412_v39  ;;  %v163_v52 = vpop.f32.mrb[2].mxu1 }
 0x22c   :  { %v164_v53 = vpop.f32.mrb[3].mxu1 }
 0x22d   :  { %v239_v54 = vadd.f32 %v235_v47, %v162_v51  ;;  %247 = vrot.lane.b32.xlu0 %v162_v51, %s2251_s3 }
 0x22f   :  { %v1516_v55 = vmul.f32 -1.442695, %v239_v54 }
 0x231   :  { %264 = vrot.lane.b32.xlu0 %v115_v42, %s2251_s3  ;;  %2169 = vpow2.f32 %v1516_v55 }
 0x23b   :  { %v2170_v56 = vpop.eup %2169 }
 0x23c   :  { %v243_v57 = vadd.f32 1.0, %v2170_v56 }
 0x23e   :  { %2171 = vrcp.f32 %v243_v57 }
 0x248   :  { %v2172_v58 = vpop.eup %2171 }
 0x249   :  { %v257_v6 = vsub.f32 1.0, %v2172_v58 }
 0x29f   :  { %v248_v59 = vpop.permute.xlu0 %247 }
 0x2a0   :  { %v250_v60 = vmul.f32 %v2172_v58, %v248_v59 }
 0x2a2   :  { %252 = vrot.lane.b32.xlu1 %v250_v60, %s2251_s3 }
 0x2a3   :  { %v265_v5 = vpop.permute.xlu0 %264 }
 0x2a4   :  { %v267_v8 = vmul.f32 %v2172_v58, %v265_v5 }
 0x314   :  { %v253_v61 = vpop.permute.xlu1 %252 }
 0x315   :  { %v255_v62 = vadd.f32 %v253_v61, %v235_v47 }
 0x317   :  { %2173 = vtanh.f32 %v255_v62 }
 0x321   :  { %v2174_v63 = vpop.eup %2173 }
 0x322   :  { %259 = vrot.lane.b32.xlu1 %v2174_v63, %s2252_s5 }
 0x394   :  { %v260_v7 = vpop.permute.xlu1 %259 }
 0x395   :  { %v262_v9 = vmul.f32 %v260_v7, %v257_v6 }
 0x397   :  { %v2429_v12 = vadd.f32 %v267_v8, %v262_v9 }
 0x399   :  { %v269_v14 = vpack.c.bf16 %v2429_v12, %v2429_v12 }
 0x39b   :  { %271 = vrot.lane.b32.xlu1 %v269_v14, %s2252_s5 }
 0x40d   :  { %v272_v15 = vpop.permute.xlu1 %271 }
 0x40e   :  { %1517 = vmatmul.mubr.msk.bf16.vlgmr.msra.gmra.mrb[4].mxu1 %vm75_vm0, %v272_v15 }
 0x40f   :  { %1988 = vmatpush3.bf16.msra.mxu1 %v2324_v11  ;;  %1749 = vmatprep.mubr.msk.f32.mxu1 %vm2247_vm2, %v2248_v36 }
 0x410   :  { %1989 = vmatprep.subr.bf16.mxu1 %v2246_v10 }
 0x413   :  { %1991 = vmatpush3.bf16.msra.mxu1 %v2330_v13 }
 0x414   :  { %1992 = vmatprep.subr.bf16.mxu1 %v2246_v10 }
 0x417   :  { %1994 = vmatpush3.bf16.msra.mxu1 %v2340_v16 }
 0x418   :  { %1995 = vmatprep.subr.bf16.mxu1 %v2246_v10 }
 0x41b   :  { %1997 = vmatpush3.bf16.msra.mxu1 %v2350_v19 }
 0x41c   :  { %1998 = vmatprep.subr.bf16.mxu1 %v2246_v10 }
 0x41f   :  { %2000 = vmatpush3.bf16.msra.mxu1 %v2360_v22 }
 0x420   :  { %2001 = vmatprep.subr.bf16.mxu1 %v2246_v10 }
 0x423   :  { %2003 = vmatpush3.bf16.msra.mxu1 %v2370_v25 }
 0x424   :  { %2004 = vmatprep.subr.bf16.mxu1 %v2246_v10 }
 0x427   :  { %2006 = vmatpush3.bf16.msra.mxu1 %v2380_v28 }
 0x428   :  { %2007 = vmatprep.subr.bf16.mxu1 %v2246_v10 }
 0x42b   :  { %2009 = vmatpush3.bf16.msra.mxu1 %v2395_v34 }
 0x42c   :  { %613 = vmatprep.subr.bf16.mxu1 %v2282_v0 }
 0x4e1   :  { %v310_v20 = vpop.f32.mrb[4].mxu1 }
 0x4e2   :  { %v311_v21 = vadd.f32 %v310_v20, %v2455_v18  ;;  %v312_v23 = vpop.f32.mrb[5].mxu1 }
 0x4e3   :  { %v314_v24 = vpop.f32.mrb[6].mxu1  ;;  %v313_v43 = vadd.f32 %v312_v23, %v2412_v39 }
 0x4e4   :  { %317 = vst [vmem:[#allocation2] sm:$0x3] %v311_v21  ;;  %v315_v26 = vpop.f32.mrb[7].mxu1  ;;  %v319_v27 = vsel %vm318_vm3, %v311_v21, -inf }
 0x4e5   :  { %320 = vmax.xlane.f32.xlu0 %v319_v27 }
 0x572   :  { %v321_v29 = vpop.xlane.xlu0 %320 }
 0x573   :  { %vm322_vm4 = vcmp.eq.f32.partialorder %v311_v21, %v321_v29 }
 0x574   :  { %v323_v32 = vsel %vm322_vm4, %v2385_v30, 128 }
 0x575   :  { %v324_v31 = vsel %vm318_vm3, %v323_v32, 2147483647 }
 0x576   :  { %v326_v33 = vshra.s32 %v324_v31, 16  ;;  %v325_v37 = vand.u32 65535, %v324_v31 }
 0x578   :  { %v328_v35 = vcvt.s32.f32 %v326_v33  ;;  %v327_v41 = vcvt.s32.f32 %v325_v37 }
 0x57a   :  { %329 = vmin.xlane.f32.xlu1 %v328_v35 }
 0x607   :  { %v330_v40 = vpop.xlane.xlu1 %329 }
 0x608   :  { %vm331_vm5 = vcmp.eq.f32.partialorder %v328_v35, %v330_v40  ;;  %v336_v44 = vcvt.f32.s32 %v330_v40 }
 0x609   :  { %v332_v42 = vsel %vm331_vm5, %v327_v41, inf }
 0x60a   :  { %333 = vmin.xlane.f32.xlu0 %v332_v42  ;;  %v337_v46 = vshll.u32 %v336_v44, 16 }
 0x620   :  { %420 = vrot.lane.b32.xlu0 %v313_v43, %s2251_s3 }
 0x697   :  { %v334_v45 = vpop.xlane.xlu0 %333 }
 0x698   :  { %v335_v47 = vcvt.f32.s32 %v334_v45 }
 0x69a   :  { %v338_v48 = vadd.s32 %v337_v46, %v335_v47 }
 0x69b   :  { %v421_v56 = vpop.permute.xlu0 %420 }
 0x69c   :  { %vm339_vm6 = vcmp.eq.s32.totalorder %v2385_v30, %v338_v48 }
 0x69d   :  { %1750 = vmatmul.mubr.msk.f32.vlgmr.msra.gmra.mrb[8].mxu1 %vm339_vm6, %v2249_v38 }
 0x69e   :  { %614 = vmatpush1.bf16.msra.mxu1 %v2287_v1  ;;  %645 = vmatprep.mubr.bf16.mxu1 %v2245_v2 }
 0x69f   :  { %615 = vmatprep.subr.bf16.mxu1 %v2295_v3 }
 0x6a2   :  { %616 = vmatpush1.bf16.msra.mxu1 %v2302_v4 }
 0x6a3   :  { %2034 = vmatprep.subr.bf16.mxu1 %v2246_v10 }
 0x770   :  { %v408_v49 = vpop.f32.mrb[8].mxu1 }
 0x771   :  { %v412_v50 = vadd.f32 %v408_v49, %v313_v43  ;;  %v1751_v51 = vpop.f32.mrb[9].mxu1 }
 0x773   :  { %v1520_v52 = vmul.f32 -1.442695, %v412_v50 }
 0x775   :  { %2175 = vpow2.f32 %v1520_v52 }
 0x77f   :  { %v2176_v53 = vpop.eup %2175 }
 0x780   :  { %v416_v54 = vadd.f32 1.0, %v2176_v53 }
 0x782   :  { %2177 = vrcp.f32 %v416_v54 }
 0x78c   :  { %v2178_v55 = vpop.eup %2177 }
 0x78d   :  { %v423_v57 = vmul.f32 %v2178_v55, %v421_v56  ;;  %v430_v61 = vsub.f32 1.0, %v2178_v55  ;;  %v436_v63 = vmul.f32 %v2178_v55, %v2429_v12 }
 0x78f   :  { %425 = vrot.lane.b32.xlu1 %v423_v57, %s2251_s3 }
 0x801   :  { %v426_v58 = vpop.permute.xlu1 %425 }
 0x802   :  { %v428_v59 = vadd.f32 %v426_v58, %v408_v49 }
 0x804   :  { %2179 = vtanh.f32 %v428_v59 }
 0x80e   :  { %v2180_v60 = vpop.eup %2179 }
 0x80f   :  { %432 = vrot.lane.b32.xlu1 %v2180_v60, %s2252_s5 }
 0x881   :  { %v433_v62 = vpop.permute.xlu1 %432 }
 0x882   :  { %v435_v5 = vmul.f32 %v433_v62, %v430_v61 }
 0x884   :  { %v2473_v6 = vadd.f32 %v436_v63, %v435_v5 }
 0x886   :  { %v438_v7 = vpack.c.bf16 %v2473_v6, %v2473_v6 }
 0x888   :  { %440 = vrot.lane.b32.xlu0 %v438_v7, %s2252_s5 }
 0x8fa   :  { %v441_v8 = vpop.permute.xlu0 %440 }
 0x8fb   :  { %1521 = vmatmul.mubr.msk.bf16.vlgmr.msra.gmra.mrb[8].mxu0 %vm75_vm0, %v441_v8 }
 0x8fc   :  { %2012 = vmatpush3.bf16.msra.mxu0 %v2324_v11  ;;  %1784 = vmatprep.mubr.msk.f32.mxu0 %vm2247_vm2, %v2248_v36 }
 0x8fd   :  { %2013 = vmatprep.subr.bf16.mxu0 %v2246_v10 }
 0x900   :  { %2015 = vmatpush3.bf16.msra.mxu0 %v2330_v13 }
 0x901   :  { %2016 = vmatprep.subr.bf16.mxu0 %v2246_v10 }
 0x904   :  { %2018 = vmatpush3.bf16.msra.mxu0 %v2340_v16 }
 0x905   :  { %2019 = vmatprep.subr.bf16.mxu0 %v2246_v10 }
 0x908   :  { %2021 = vmatpush3.bf16.msra.mxu0 %v2350_v19 }
 0x909   :  { %2022 = vmatprep.subr.bf16.mxu0 %v2246_v10 }
 0x90c   :  { %2024 = vmatpush3.bf16.msra.mxu0 %v2360_v22 }
 0x90d   :  { %2025 = vmatprep.subr.bf16.mxu0 %v2246_v10 }
 0x910   :  { %2027 = vmatpush3.bf16.msra.mxu0 %v2370_v25 }
 0x911   :  { %2028 = vmatprep.subr.bf16.mxu0 %v2246_v10 }
 0x914   :  { %2030 = vmatpush3.bf16.msra.mxu0 %v2380_v28 }
 0x915   :  { %2031 = vmatprep.subr.bf16.mxu0 %v2246_v10 }
 0x918   :  { %2033 = vmatpush3.bf16.msra.mxu0 %v2395_v34 }
 0x919   :  { %781 = vmatprep.subr.bf16.mxu0 %v2282_v0 }
 0x9ce   :  { %v479_v9 = vpop.f32.mrb[8].mxu0 }
 0x9cf   :  { %v480_v12 = vadd.f32 %v479_v9, %v2455_v18  ;;  %v481_v14 = vpop.f32.mrb[9].mxu0 }
 0x9d0   :  { %v483_v15 = vpop.f32.mrb[10].mxu0  ;;  %v482_v21 = vadd.f32 %v481_v14, %v2412_v39 }
 0x9d1   :  { %486 = vst [vmem:[#allocation2 + $0x2] sm:$0x3] %v480_v12  ;;  %v484_v17 = vpop.f32.mrb[11].mxu0  ;;  %v487_v20 = vsel %vm318_vm3, %v480_v12, -inf }
 0x9d2   :  { %488 = vmax.xlane.f32.xlu1 %v487_v20 }
 0x9e3   :  { %588 = vrot.lane.b32.xlu1 %v482_v21, %s2251_s3 }
 0xa5f   :  { %v489_v23 = vpop.xlane.xlu1 %488 }
 0xa60   :  { %vm490_vm7 = vcmp.eq.f32.partialorder %v480_v12, %v489_v23 }
 0xa61   :  { %v491_v24 = vsel %vm490_vm7, %v2385_v30, 128 }
 0xa62   :  { %v492_v26 = vsel %vm318_vm3, %v491_v24, 2147483647 }
 0xa63   :  { %v494_v27 = vshra.s32 %v492_v26, 16  ;;  %v493_v32 = vand.u32 65535, %v492_v26  ;;  %v589_v51 = vpop.permute.xlu1 %588 }
 0xa65   :  { %v496_v29 = vcvt.s32.f32 %v494_v27  ;;  %v495_v33 = vcvt.s32.f32 %v493_v32 }
 0xa67   :  { %497 = vmin.xlane.f32.xlu0 %v496_v29 }
 0xaf4   :  { %v498_v31 = vpop.xlane.xlu0 %497 }
 0xaf5   :  { %vm499_vm8 = vcmp.eq.f32.partialorder %v496_v29, %v498_v31  ;;  %v504_v37 = vcvt.f32.s32 %v498_v31 }
 0xaf6   :  { %v500_v35 = vsel %vm499_vm8, %v495_v33, inf }
 0xaf7   :  { %501 = vmin.xlane.f32.xlu0 %v500_v35  ;;  %v505_v41 = vshll.u32 %v504_v37, 16 }
 0xb84   :  { %v502_v40 = vpop.xlane.xlu0 %501 }
 0xb85   :  { %v503_v42 = vcvt.f32.s32 %v502_v40 }
 0xb87   :  { %v506_v43 = vadd.s32 %v505_v41, %v503_v42 }
 0xb89   :  { %vm507_vm9 = vcmp.eq.s32.totalorder %v2385_v30, %v506_v43 }
 0xb8a   :  { %1785 = vmatmul.mubr.msk.f32.vlgmr.msra.gmra.mrb[6].mxu0 %vm507_vm9, %v2249_v38 }
 0xb8b   :  { %782 = vmatpush1.bf16.msra.mxu0 %v2287_v1  ;;  %813 = vmatprep.mubr.bf16.mxu0 %v2245_v2 }
 0xb8c   :  { %783 = vmatprep.subr.bf16.mxu0 %v2295_v3 }
 0xb8f   :  { %784 = vmatpush1.bf16.msra.mxu0 %v2302_v4 }
 0xb90   :  { %2058 = vmatprep.subr.bf16.mxu0 %v2246_v10 }
 0xc5d   :  { %v576_v44 = vpop.f32.mrb[6].mxu0 }
 0xc5e   :  { %v580_v45 = vadd.f32 %v576_v44, %v482_v21  ;;  %v1786_v46 = vpop.f32.mrb[7].mxu0 }
 0xc60   :  { %v1524_v47 = vmul.f32 -1.442695, %v580_v45 }
 0xc62   :  { %2181 = vpow2.f32 %v1524_v47 }
 0xc6c   :  { %v2182_v48 = vpop.eup %2181 }
 0xc6d   :  { %v584_v49 = vadd.f32 1.0, %v2182_v48 }
 0xc6f   :  { %2183 = vrcp.f32 %v584_v49 }
 0xc79   :  { %v2184_v50 = vpop.eup %2183 }
 0xc7a   :  { %v591_v52 = vmul.f32 %v2184_v50, %v589_v51  ;;  %v598_v56 = vsub.f32 1.0, %v2184_v50  ;;  %v604_v58 = vmul.f32 %v2184_v50, %v2473_v6 }
 0xc7c   :  { %593 = vrot.lane.b32.xlu0 %v591_v52, %s2251_s3 }
 0xcee   :  { %v594_v53 = vpop.permute.xlu0 %593 }
 0xcef   :  { %v596_v54 = vadd.f32 %v594_v53, %v576_v44 }
 0xcf1   :  { %2185 = vtanh.f32 %v596_v54 }
 0xcfb   :  { %v2186_v55 = vpop.eup %2185 }
 0xcfc   :  { %600 = vrot.lane.b32.xlu1 %v2186_v55, %s2252_s5 }
 0xd6e   :  { %v601_v57 = vpop.permute.xlu1 %600 }
 0xd6f   :  { %v603_v59 = vmul.f32 %v601_v57, %v598_v56 }
 0xd71   :  { %v2513_v60 = vadd.f32 %v604_v58, %v603_v59 }
 0xd73   :  { %v606_v61 = vpack.c.bf16 %v2513_v60, %v2513_v60 }
 0xd75   :  { %608 = vrot.lane.b32.xlu1 %v606_v61, %s2252_s5 }
 0xde7   :  { %v609_v62 = vpop.permute.xlu1 %608 }
 0xde8   :  { %1525 = vmatmul.mubr.msk.bf16.vlgmr.msra.gmra.mrb[12].mxu1 %vm75_vm0, %v609_v62 }
 0xde9   :  { %2036 = vmatpush3.bf16.msra.mxu1 %v2324_v11  ;;  %1819 = vmatprep.mubr.msk.f32.mxu1 %vm2247_vm2, %v2248_v36 }
 0xdea   :  { %2037 = vmatprep.subr.bf16.mxu1 %v2246_v10 }
 0xded   :  { %2039 = vmatpush3.bf16.msra.mxu1 %v2330_v13 }
 0xdee   :  { %2040 = vmatprep.subr.bf16.mxu1 %v2246_v10 }
 0xdf1   :  { %2042 = vmatpush3.bf16.msra.mxu1 %v2340_v16 }
 0xdf2   :  { %2043 = vmatprep.subr.bf16.mxu1 %v2246_v10 }
 0xdf5   :  { %2045 = vmatpush3.bf16.msra.mxu1 %v2350_v19 }
 0xdf6   :  { %2046 = vmatprep.subr.bf16.mxu1 %v2246_v10 }
 0xdf9   :  { %2048 = vmatpush3.bf16.msra.mxu1 %v2360_v22 }
 0xdfa   :  { %2049 = vmatprep.subr.bf16.mxu1 %v2246_v10 }
 0xdfd   :  { %2051 = vmatpush3.bf16.msra.mxu1 %v2370_v25 }
 0xdfe   :  { %2052 = vmatprep.subr.bf16.mxu1 %v2246_v10 }
 0xe01   :  { %2054 = vmatpush3.bf16.msra.mxu1 %v2380_v28 }
 0xe02   :  { %2055 = vmatprep.subr.bf16.mxu1 %v2246_v10 }
 0xe05   :  { %2057 = vmatpush3.bf16.msra.mxu1 %v2395_v34 }
 0xe06   :  { %949 = vmatprep.subr.bf16.mxu1 %v2282_v0 }
 0xebb   :  { %v647_v63 = vpop.f32.mrb[12].mxu1 }
 0xebc   :  { %v648_v5 = vadd.f32 %v647_v63, %v2455_v18  ;;  %v649_v6 = vpop.f32.mrb[13].mxu1 }
 0xebd   :  { %v651_v7 = vpop.f32.mrb[14].mxu1  ;;  %v650_v27 = vadd.f32 %v649_v6, %v2412_v39 }
 0xebe   :  { %654 = vst [vmem:[#allocation2 + $0x4] sm:$0x3] %v648_v5  ;;  %v652_v8 = vpop.f32.mrb[15].mxu1  ;;  %v655_v9 = vsel %vm318_vm3, %v648_v5, -inf }
 0xebf   :  { %656 = vmax.xlane.f32.xlu0 %v655_v9 }
 0xf4c   :  { %v657_v12 = vpop.xlane.xlu0 %656 }
 0xf4d   :  { %vm658_vm10 = vcmp.eq.f32.partialorder %v648_v5, %v657_v12 }
 0xf4e   :  { %v659_v14 = vsel %vm658_vm10, %v2385_v30, 128 }
 0xf4f   :  { %v660_v15 = vsel %vm318_vm3, %v659_v14, 2147483647 }
 0xf50   :  { %v662_v17 = vshra.s32 %v660_v15, 16  ;;  %v661_v21 = vand.u32 65535, %v660_v15 }
 0xf52   :  { %v664_v20 = vcvt.s32.f32 %v662_v17  ;;  %v663_v24 = vcvt.s32.f32 %v661_v21 }
 0xf54   :  { %665 = vmin.xlane.f32.xlu1 %v664_v20 }
 0xfe1   :  { %v666_v23 = vpop.xlane.xlu1 %665 }
 0xfe2   :  { %vm667_vm11 = vcmp.eq.f32.partialorder %v664_v20, %v666_v23  ;;  %v672_v29 = vcvt.f32.s32 %v666_v23 }
 0xfe3   :  { %v668_v26 = vsel %vm667_vm11, %v663_v24, inf }
 0xfe4   :  { %669 = vmin.xlane.f32.xlu0 %v668_v26  ;;  %v673_v31 = vshll.u32 %v672_v29, 16 }
 0xffa   :  { %756 = vrot.lane.b32.xlu0 %v650_v27, %s2251_s3 }
0x1071   :  { %v670_v32 = vpop.xlane.xlu0 %669 }
0x1072   :  { %v671_v33 = vcvt.f32.s32 %v670_v32 }
0x1074   :  { %v674_v35 = vadd.s32 %v673_v31, %v671_v33 }
0x1075   :  { %v757_v46 = vpop.permute.xlu0 %756 }
0x1076   :  { %vm675_vm12 = vcmp.eq.s32.totalorder %v2385_v30, %v674_v35 }
0x1077   :  { %1820 = vmatmul.mubr.msk.f32.vlgmr.msra.gmra.mrb[10].mxu1 %vm675_vm12, %v2249_v38 }
0x1078   :  { %950 = vmatpush1.bf16.msra.mxu1 %v2287_v1  ;;  %981 = vmatprep.mubr.bf16.mxu1 %v2245_v2 }
0x1079   :  { %951 = vmatprep.subr.bf16.mxu1 %v2295_v3 }
0x107c   :  { %952 = vmatpush1.bf16.msra.mxu1 %v2302_v4 }
0x107d   :  { %2082 = vmatprep.subr.bf16.mxu1 %v2246_v10 }
0x114a   :  { %v744_v37 = vpop.f32.mrb[10].mxu1 }
0x114b   :  { %v748_v40 = vadd.f32 %v744_v37, %v650_v27  ;;  %v1821_v41 = vpop.f32.mrb[11].mxu1 }
0x114d   :  { %v1528_v42 = vmul.f32 -1.442695, %v748_v40 }
0x114f   :  { %2187 = vpow2.f32 %v1528_v42 }
0x1159   :  { %v2188_v43 = vpop.eup %2187 }
0x115a   :  { %v752_v44 = vadd.f32 1.0, %v2188_v43 }
0x115c   :  { %2189 = vrcp.f32 %v752_v44 }
0x1166   :  { %v2190_v45 = vpop.eup %2189 }
0x1167   :  { %v759_v47 = vmul.f32 %v2190_v45, %v757_v46  ;;  %v766_v51 = vsub.f32 1.0, %v2190_v45  ;;  %v772_v53 = vmul.f32 %v2190_v45, %v2513_v60 }
0x1169   :  { %761 = vrot.lane.b32.xlu1 %v759_v47, %s2251_s3 }
0x11db   :  { %v762_v48 = vpop.permute.xlu1 %761 }
0x11dc   :  { %v764_v49 = vadd.f32 %v762_v48, %v744_v37 }
0x11de   :  { %2191 = vtanh.f32 %v764_v49 }
0x11e8   :  { %v2192_v50 = vpop.eup %2191 }
0x11e9   :  { %768 = vrot.lane.b32.xlu1 %v2192_v50, %s2252_s5 }
0x125b   :  { %v769_v52 = vpop.permute.xlu1 %768 }
0x125c   :  { %v771_v54 = vmul.f32 %v769_v52, %v766_v51 }
0x125e   :  { %v2553_v55 = vadd.f32 %v772_v53, %v771_v54 }
0x1260   :  { %v774_v56 = vpack.c.bf16 %v2553_v55, %v2553_v55 }
0x1262   :  { %776 = vrot.lane.b32.xlu0 %v774_v56, %s2252_s5 }
0x12d4   :  { %v777_v57 = vpop.permute.xlu0 %776 }
0x12d5   :  { %1529 = vmatmul.mubr.msk.bf16.vlgmr.msra.gmra.mrb[12].mxu0 %vm75_vm0, %v777_v57 }
0x12d6   :  { %2060 = vmatpush3.bf16.msra.mxu0 %v2324_v11  ;;  %1854 = vmatprep.mubr.msk.f32.mxu0 %vm2247_vm2, %v2248_v36 }
0x12d7   :  { %2061 = vmatprep.subr.bf16.mxu0 %v2246_v10 }
0x12da   :  { %2063 = vmatpush3.bf16.msra.mxu0 %v2330_v13 }
0x12db   :  { %2064 = vmatprep.subr.bf16.mxu0 %v2246_v10 }
0x12de   :  { %2066 = vmatpush3.bf16.msra.mxu0 %v2340_v16 }
0x12df   :  { %2067 = vmatprep.subr.bf16.mxu0 %v2246_v10 }
0x12e2   :  { %2069 = vmatpush3.bf16.msra.mxu0 %v2350_v19 }
0x12e3   :  { %2070 = vmatprep.subr.bf16.mxu0 %v2246_v10 }
0x12e6   :  { %2072 = vmatpush3.bf16.msra.mxu0 %v2360_v22 }
0x12e7   :  { %2073 = vmatprep.subr.bf16.mxu0 %v2246_v10 }
0x12ea   :  { %2075 = vmatpush3.bf16.msra.mxu0 %v2370_v25 }
0x12eb   :  { %2076 = vmatprep.subr.bf16.mxu0 %v2246_v10 }
0x12ee   :  { %2078 = vmatpush3.bf16.msra.mxu0 %v2380_v28 }
0x12ef   :  { %2079 = vmatprep.subr.bf16.mxu0 %v2246_v10 }
0x12f2   :  { %2081 = vmatpush3.bf16.msra.mxu0 %v2395_v34 }
0x12f3   :  { %1117 = vmatprep.subr.bf16.mxu0 %v2282_v0 }
0x13a8   :  { %v815_v58 = vpop.f32.mrb[12].mxu0 }
0x13a9   :  { %v816_v59 = vadd.f32 %v815_v58, %v2455_v18  ;;  %v817_v60 = vpop.f32.mrb[13].mxu0 }
0x13aa   :  { %v819_v61 = vpop.f32.mrb[14].mxu0  ;;  %v818_v5 = vadd.f32 %v817_v60, %v2412_v39 }
0x13ab   :  { %822 = vst [vmem:[#allocation2 + $0x6] sm:$0x3] %v816_v59  ;;  %v820_v62 = vpop.f32.mrb[15].mxu0  ;;  %v823_v63 = vsel %vm318_vm3, %v816_v59, -inf }
0x13ac   :  { %824 = vmax.xlane.f32.xlu1 %v823_v63 }
0x13bd   :  { %924 = vrot.lane.b32.xlu1 %v818_v5, %s2251_s3 }
0x1439   :  { %v825_v6 = vpop.xlane.xlu1 %824 }
0x143a   :  { %vm826_vm13 = vcmp.eq.f32.partialorder %v816_v59, %v825_v6 }
0x143b   :  { %v827_v7 = vsel %vm826_vm13, %v2385_v30, 128 }
0x143c   :  { %v828_v8 = vsel %vm318_vm3, %v827_v7, 2147483647 }
0x143d   :  { %v830_v9 = vshra.s32 %v828_v8, 16  ;;  %v829_v14 = vand.u32 65535, %v828_v8  ;;  %v925_v41 = vpop.permute.xlu1 %924 }
0x143f   :  { %v832_v12 = vcvt.s32.f32 %v830_v9  ;;  %v831_v17 = vcvt.s32.f32 %v829_v14 }
0x1441   :  { %833 = vmin.xlane.f32.xlu0 %v832_v12 }
0x14ce   :  { %v834_v15 = vpop.xlane.xlu0 %833 }
0x14cf   :  { %vm835_vm14 = vcmp.eq.f32.partialorder %v832_v12, %v834_v15  ;;  %v840_v21 = vcvt.f32.s32 %v834_v15 }
0x14d0   :  { %v836_v20 = vsel %vm835_vm14, %v831_v17, inf }
0x14d1   :  { %837 = vmin.xlane.f32.xlu0 %v836_v20  ;;  %v841_v24 = vshll.u32 %v840_v21, 16 }
0x155e   :  { %v838_v23 = vpop.xlane.xlu0 %837 }
0x155f   :  { %v839_v26 = vcvt.f32.s32 %v838_v23 }
0x1561   :  { %v842_v27 = vadd.s32 %v841_v24, %v839_v26 }
0x1563   :  { %vm843_vm15 = vcmp.eq.s32.totalorder %v2385_v30, %v842_v27 }
0x1564   :  { %1855 = vmatmul.mubr.msk.f32.vlgmr.msra.gmra.mrb[16].mxu0 %vm843_vm15, %v2249_v38 }
0x1565   :  { %1118 = vmatpush1.bf16.msra.mxu0 %v2287_v1  ;;  %1149 = vmatprep.mubr.bf16.mxu0 %v2245_v2 }
0x1566   :  { %1119 = vmatprep.subr.bf16.mxu0 %v2295_v3 }
0x1569   :  { %1120 = vmatpush1.bf16.msra.mxu0 %v2302_v4 }
0x156a   :  { %2106 = vmatprep.subr.bf16.mxu0 %v2246_v10 }
0x1637   :  { %v912_v29 = vpop.f32.mrb[16].mxu0 }
0x1638   :  { %v916_v32 = vadd.f32 %v912_v29, %v818_v5  ;;  %v1856_v31 = vpop.f32.mrb[17].mxu0 }
0x163a   :  { %v1532_v33 = vmul.f32 -1.442695, %v916_v32 }
0x163c   :  { %2193 = vpow2.f32 %v1532_v33 }
0x1646   :  { %v2194_v35 = vpop.eup %2193 }
0x1647   :  { %v920_v37 = vadd.f32 1.0, %v2194_v35 }
0x1649   :  { %2195 = vrcp.f32 %v920_v37 }
0x1653   :  { %v2196_v40 = vpop.eup %2195 }
0x1654   :  { %v927_v42 = vmul.f32 %v2196_v40, %v925_v41  ;;  %v934_v46 = vsub.f32 1.0, %v2196_v40  ;;  %v940_v48 = vmul.f32 %v2196_v40, %v2553_v55 }
0x1656   :  { %929 = vrot.lane.b32.xlu0 %v927_v42, %s2251_s3 }
0x16c8   :  { %v930_v43 = vpop.permute.xlu0 %929 }
0x16c9   :  { %v932_v44 = vadd.f32 %v930_v43, %v912_v29 }
0x16cb   :  { %2197 = vtanh.f32 %v932_v44  ;;  %v2217_v44 = vld [vmem:[%s2730_s1 + $0x4] ss:$8 sps:$4 sm:$0xff]  }
0x16d5   :  { %v2198_v45 = vpop.eup %2197 }
0x16d6   :  { %936 = vrot.lane.b32.xlu1 %v2198_v45, %s2252_s5 }
0x1748   :  { %v937_v47 = vpop.permute.xlu1 %936 }
0x1749   :  { %v939_v49 = vmul.f32 %v937_v47, %v934_v46 }
0x174b   :  { %v2593_v50 = vadd.f32 %v940_v48, %v939_v49 }
0x174d   :  { %v942_v51 = vpack.c.bf16 %v2593_v50, %v2593_v50 }
0x174f   :  { %944 = vrot.lane.b32.xlu1 %v942_v51, %s2252_s5 }
0x17c1   :  { %v945_v52 = vpop.permute.xlu1 %944 }
0x17c2   :  { %1533 = vmatmul.mubr.msk.bf16.vlgmr.msra.gmra.mrb[16].mxu1 %vm75_vm0, %v945_v52 }
0x17c3   :  { %2084 = vmatpush3.bf16.msra.mxu1 %v2324_v11  ;;  %1889 = vmatprep.mubr.msk.f32.mxu1 %vm2247_vm2, %v2248_v36 }
0x17c4   :  { %2085 = vmatprep.subr.bf16.mxu1 %v2246_v10 }
0x17c7   :  { %2087 = vmatpush3.bf16.msra.mxu1 %v2330_v13 }
0x17c8   :  { %2088 = vmatprep.subr.bf16.mxu1 %v2246_v10 }
0x17cb   :  { %2090 = vmatpush3.bf16.msra.mxu1 %v2340_v16 }
0x17cc   :  { %2091 = vmatprep.subr.bf16.mxu1 %v2246_v10 }
0x17cf   :  { %2093 = vmatpush3.bf16.msra.mxu1 %v2350_v19 }
0x17d0   :  { %2094 = vmatprep.subr.bf16.mxu1 %v2246_v10 }
0x17d3   :  { %2096 = vmatpush3.bf16.msra.mxu1 %v2360_v22 }
0x17d4   :  { %2097 = vmatprep.subr.bf16.mxu1 %v2246_v10 }
0x17d7   :  { %2099 = vmatpush3.bf16.msra.mxu1 %v2370_v25 }
0x17d8   :  { %2100 = vmatprep.subr.bf16.mxu1 %v2246_v10 }
0x17db   :  { %2102 = vmatpush3.bf16.msra.mxu1 %v2380_v28 }
0x17dc   :  { %2103 = vmatprep.subr.bf16.mxu1 %v2246_v10 }
0x17df   :  { %2105 = vmatpush3.bf16.msra.mxu1 %v2395_v34 }
0x17e0   :  { %1285 = vmatprep.subr.bf16.mxu1 %v2282_v0 }
0x1895   :  { %v983_v53 = vpop.f32.mrb[16].mxu1 }
0x1896   :  { %v984_v54 = vadd.f32 %v983_v53, %v2455_v18  ;;  %v985_v55 = vpop.f32.mrb[17].mxu1 }
0x1897   :  { %v987_v56 = vpop.f32.mrb[18].mxu1  ;;  %v986_v8 = vadd.f32 %v985_v55, %v2412_v39 }
0x1898   :  { %990 = vst [vmem:[#allocation2 + $0x8] sm:$0x3] %v984_v54  ;;  %v988_v57 = vpop.f32.mrb[19].mxu1  ;;  %v991_v58 = vsel %vm318_vm3, %v984_v54, -inf }
0x1899   :  { %992 = vmax.xlane.f32.xlu0 %v991_v58 }
0x1926   :  { %v993_v59 = vpop.xlane.xlu0 %992 }
0x1927   :  { %vm994_vm1 = vcmp.eq.f32.partialorder %v984_v54, %v993_v59 }
0x1928   :  { %v995_v60 = vsel %vm994_vm1, %v2385_v30, 128 }
0x1929   :  { %v996_v61 = vsel %vm318_vm3, %v995_v60, 2147483647 }
0x192a   :  { %v998_v62 = vshra.s32 %v996_v61, 16  ;;  %v997_v0 = vand.u32 65535, %v996_v61 }
0x192c   :  { %v1000_v63 = vcvt.s32.f32 %v998_v62  ;;  %v999_v6 = vcvt.s32.f32 %v997_v0 }
0x192e   :  { %1001 = vmin.xlane.f32.xlu1 %v1000_v63 }
0x19bb   :  { %v1002_v5 = vpop.xlane.xlu1 %1001 }
0x19bc   :  { %vm1003_vm4 = vcmp.eq.f32.partialorder %v1000_v63, %v1002_v5  ;;  %v1008_v9 = vcvt.f32.s32 %v1002_v5 }
0x19bd   :  { %v1004_v7 = vsel %vm1003_vm4, %v999_v6, inf  ;;  %v2218_v6 = vld [vmem:[%s2730_s1] ss:$8 sps:$4 sm:$0xff]  }
0x19be   :  { %1005 = vmin.xlane.f32.xlu0 %v1004_v7  ;;  %v1009_v14 = vshll.u32 %v1008_v9, 16  ;;  %v2219_v7 = vld [vmem:[%s2730_s1 + $0x14] ss:$8 sps:$4 sm:$0xff]  }
0x19d4   :  { %1092 = vrot.lane.b32.xlu0 %v986_v8, %s2251_s3 }
0x1a4b   :  { %v1006_v12 = vpop.xlane.xlu0 %1005 }
0x1a4c   :  { %v1007_v15 = vcvt.f32.s32 %v1006_v12 }
0x1a4e   :  { %v1010_v17 = vadd.s32 %v1009_v14, %v1007_v15 }
0x1a4f   :  { %v1093_v32 = vpop.permute.xlu0 %1092 }
0x1a50   :  { %vm1011_vm5 = vcmp.eq.s32.totalorder %v2385_v30, %v1010_v17 }
0x1a51   :  { %1890 = vmatmul.mubr.msk.f32.vlgmr.msra.gmra.mrb[20].mxu1 %vm1011_vm5, %v2249_v38 }
0x1a52   :  { %1286 = vmatpush1.bf16.msra.mxu1 %v2287_v1  ;;  %1317 = vmatprep.mubr.bf16.mxu1 %v2245_v2 }
0x1a53   :  { %1287 = vmatprep.subr.bf16.mxu1 %v2295_v3 }
0x1a56   :  { %1288 = vmatpush1.bf16.msra.mxu1 %v2302_v4 }
0x1a57   :  { %2130 = vmatprep.subr.bf16.mxu1 %v2246_v10 }
0x1b24   :  { %v1080_v20 = vpop.f32.mrb[20].mxu1 }
0x1b25   :  { %v1084_v21 = vadd.f32 %v1080_v20, %v986_v8  ;;  %v1891_v23 = vpop.f32.mrb[21].mxu1  ;;  %v2220_v8 = vld [vmem:[%s2730_s1 + $0x10] ss:$8 sps:$4 sm:$0xff]   ;;  %s2253_s1 = smov [#allocation2]  }
0x1b26   :  { %s1500_s14 = sshll.u32 %s2253_s1, 4  ;;  %s1501_s14 = int_to_ptr.vmem [resolvable:$true] %s1500_s14 }
0x1b27   :  { %v1536_v24 = vmul.f32 -1.442695, %v1084_v21  ;;  %s2221_s15 = scalar_lea.vmem %s1501_s14, 256  ;;  %p2226_p1 = scmp.lt.s32.totalorder %s1501_s14, %s1501_s14 }
0x1b28   :  { %p2222_p0 = scmp.ne.s32.totalorder %s1501_s14, %s2221_s15  ;;  %p2227_p2 = scmp.lt.s32.totalorder %s2221_s15, %s2221_s15 }
0x1b29   :  { %2199 = vpow2.f32 %v1536_v24 }
0x1b2a   :  { %p2228_p3 = por %p2227_p2, %p2226_p1 }
0x1b2c   :  { %p2229_p4 = pnand %p2228_p3, %p2222_p0 }
0x1b33   :  { %v2200_v26 = vpop.eup %2199 }
0x1b34   :  { %v1088_v27 = vadd.f32 1.0, %v2200_v26 }
0x1b36   :  { %2201 = vrcp.f32 %v1088_v27 }
0x1b40   :  { %v2202_v29 = vpop.eup %2201 }
0x1b41   :  { %v1095_v31 = vmul.f32 %v2202_v29, %v1093_v32  ;;  %v1102_v4 = vsub.f32 1.0, %v2202_v29  ;;  %v1108_v37 = vmul.f32 %v2202_v29, %v2593_v50 }
0x1b43   :  { %1097 = vrot.lane.b32.xlu1 %v1095_v31, %s2251_s3 }
0x1bb5   :  { %v1098_v1 = vpop.permute.xlu1 %1097 }
0x1bb6   :  { %v1100_v33 = vadd.f32 %v1098_v1, %v1080_v20 }
0x1bb8   :  { %2203 = vtanh.f32 %v1100_v33 }
0x1bc2   :  { %v2204_v3 = vpop.eup %2203 }
0x1bc3   :  { %1104 = vrot.lane.b32.xlu1 %v2204_v3, %s2252_s5 }
0x1c35   :  { %v1105_v35 = vpop.permute.xlu1 %1104 }
0x1c36   :  { %v1107_v40 = vmul.f32 %v1105_v35, %v1102_v4 }
0x1c38   :  { %v2633_v41 = vadd.f32 %v1108_v37, %v1107_v40 }
0x1c3a   :  { %v1110_v42 = vpack.c.bf16 %v2633_v41, %v2633_v41 }
0x1c3c   :  { %1112 = vrot.lane.b32.xlu0 %v1110_v42, %s2252_s5 }
0x1cae   :  { %v1113_v43 = vpop.permute.xlu0 %1112 }
0x1caf   :  { %1537 = vmatmul.mubr.msk.bf16.vlgmr.msra.gmra.mrb[20].mxu0 %vm75_vm0, %v1113_v43 }
0x1cb0   :  { %2108 = vmatpush3.bf16.msra.mxu0 %v2324_v11  ;;  %1924 = vmatprep.mubr.msk.f32.mxu0 %vm2247_vm2, %v2248_v36 }
0x1cb1   :  { %2109 = vmatprep.subr.bf16.mxu0 %v2246_v10 }
0x1cb4   :  { %2111 = vmatpush3.bf16.msra.mxu0 %v2330_v13 }
0x1cb5   :  { %2112 = vmatprep.subr.bf16.mxu0 %v2246_v10 }
0x1cb8   :  { %2114 = vmatpush3.bf16.msra.mxu0 %v2340_v16 }
0x1cb9   :  { %2115 = vmatprep.subr.bf16.mxu0 %v2246_v10 }
0x1cbc   :  { %2117 = vmatpush3.bf16.msra.mxu0 %v2350_v19 }
0x1cbd   :  { %2118 = vmatprep.subr.bf16.mxu0 %v2246_v10 }
0x1cc0   :  { %2120 = vmatpush3.bf16.msra.mxu0 %v2360_v22 }
0x1cc1   :  { %2121 = vmatprep.subr.bf16.mxu0 %v2246_v10 }
0x1cc4   :  { %2123 = vmatpush3.bf16.msra.mxu0 %v2370_v25 }
0x1cc5   :  { %2124 = vmatprep.subr.bf16.mxu0 %v2246_v10 }
0x1cc8   :  { %2126 = vmatpush3.bf16.msra.mxu0 %v2380_v28 }
0x1cc9   :  { %2127 = vmatprep.subr.bf16.mxu0 %v2246_v10 }
0x1ccc   :  { %2129 = vmatpush3.bf16.msra.mxu0 %v2395_v34 }
0x1ccd   :  { %1453 = vmatprep.subr.bf16.mxu0 %v2217_v44 }
0x1d82   :  { %v1151_v45 = vpop.f32.mrb[20].mxu0 }
0x1d83   :  { %v1152_v46 = vadd.f32 %v1151_v45, %v2455_v18  ;;  %v1153_v47 = vpop.f32.mrb[21].mxu0 }
0x1d84   :  { %v1155_v48 = vpop.f32.mrb[22].mxu0  ;;  %v1154_v51 = vadd.f32 %v1153_v47, %v2412_v39 }
0x1d85   :  { %1158 = vst [vmem:[#allocation2 + $0xa] sm:$0x3] %v1152_v46  ;;  %v1156_v49 = vpop.f32.mrb[23].mxu0  ;;  %v1159_v50 = vsel %vm318_vm3, %v1152_v46, -inf }
0x1d86   :  { %1160 = vmax.xlane.f32.xlu1 %v1159_v50 }
0x1d97   :  { %1260 = vrot.lane.b32.xlu1 %v1154_v51, %s2251_s3 }
0x1e13   :  { %v1161_v52 = vpop.xlane.xlu1 %1160 }
0x1e14   :  { %vm1162_vm6 = vcmp.eq.f32.partialorder %v1152_v46, %v1161_v52 }
0x1e15   :  { %v1163_v53 = vsel %vm1162_vm6, %v2385_v30, 128 }
0x1e16   :  { %v1164_v54 = vsel %vm318_vm3, %v1163_v53, 2147483647 }
0x1e17   :  { %v1166_v55 = vshra.s32 %v1164_v54, 16  ;;  %v1165_v57 = vand.u32 65535, %v1164_v54 }
0x1e19   :  { %v1168_v56 = vcvt.s32.f32 %v1166_v55  ;;  %v1167_v59 = vcvt.s32.f32 %v1165_v57 }
0x1e1b   :  { %1169 = vmin.xlane.f32.xlu0 %v1168_v56 }
0x1ea8   :  { %v1170_v58 = vpop.xlane.xlu0 %1169 }
0x1ea9   :  { %vm1171_vm7 = vcmp.eq.f32.partialorder %v1168_v56, %v1170_v58  ;;  %v1176_v61 = vcvt.f32.s32 %v1170_v58 }
0x1eaa   :  { %v1172_v60 = vsel %vm1171_vm7, %v1167_v59, inf }
0x1eab   :  { %1173 = vmin.xlane.f32.xlu0 %v1172_v60  ;;  %v1177_v63 = vshll.u32 %v1176_v61, 16 }
0x1f38   :  { %v1174_v62 = vpop.xlane.xlu0 %1173 }
0x1f39   :  { %v1175_v0 = vcvt.f32.s32 %v1174_v62 }
0x1f3b   :  { %v1178_v5 = vadd.s32 %v1177_v63, %v1175_v0 }
0x1f3d   :  { %vm1179_vm8 = vcmp.eq.s32.totalorder %v2385_v30, %v1178_v5 }
0x1f3e   :  { %1925 = vmatmul.mubr.msk.f32.vlgmr.msra.gmra.mrb[18].mxu0 %vm1179_vm8, %v2249_v38 }
0x1f3f   :  { %1454 = vmatpush1.bf16.msra.mxu0 %v2218_v6  ;;  %1485 = vmatprep.mubr.bf16.mxu0 %v2245_v2  ;;  %v1261_v2 = vpop.permute.xlu1 %1260 }
0x1f40   :  { %1455 = vmatprep.subr.bf16.mxu0 %v2219_v7 }
0x1f43   :  { %1456 = vmatpush1.bf16.msra.mxu0 %v2220_v8 }
0x2011   :  { %v1248_v9 = vpop.f32.mrb[18].mxu0 }
0x2012   :  { %v1252_v12 = vadd.f32 %v1248_v9, %v1154_v51  ;;  %v1926_v14 = vpop.f32.mrb[19].mxu0 }
0x2014   :  { %v1540_v15 = vmul.f32 -1.442695, %v1252_v12 }
0x2016   :  { %2205 = vpow2.f32 %v1540_v15 }
0x2020   :  { %v2206_v17 = vpop.eup %2205 }
0x2021   :  { %v1256_v20 = vadd.f32 1.0, %v2206_v17 }
0x2023   :  { %2207 = vrcp.f32 %v1256_v20 }
0x202d   :  { %v2208_v21 = vpop.eup %2207 }
0x202e   :  { %v1263_v23 = vmul.f32 %v2208_v21, %v1261_v2  ;;  %v1270_v29 = vsub.f32 1.0, %v2208_v21  ;;  %v1276_v31 = vmul.f32 %v2208_v21, %v2633_v41 }
0x2030   :  { %1265 = vrot.lane.b32.xlu0 %v1263_v23, %s2251_s3 }
0x20a2   :  { %v1266_v24 = vpop.permute.xlu0 %1265 }
0x20a3   :  { %v1268_v26 = vadd.f32 %v1266_v24, %v1248_v9 }
0x20a5   :  { %2209 = vtanh.f32 %v1268_v26 }
0x20af   :  { %v2210_v27 = vpop.eup %2209 }
0x20b0   :  { %1272 = vrot.lane.b32.xlu1 %v2210_v27, %s2252_s5 }
0x2122   :  { %v1273_v32 = vpop.permute.xlu1 %1272 }
0x2123   :  { %v1275_v1 = vmul.f32 %v1273_v32, %v1270_v29 }
0x2125   :  { %v2680_v33 = vadd.f32 %v1276_v31, %v1275_v1 }
0x2127   :  { %v1278_v3 = vpack.c.bf16 %v2680_v33, %v2680_v33 }
0x2129   :  { %1280 = vrot.lane.b32.xlu1 %v1278_v3, %s2252_s5 }
0x219b   :  { %v1281_v4 = vpop.permute.xlu1 %1280 }
0x219c   :  { %1541 = vmatmul.mubr.msk.bf16.vlgmr.msra.gmra.mrb[24].mxu1 %vm75_vm0, %v1281_v4 }
0x219d   :  { %2132 = vmatpush3.bf16.msra.mxu1 %v2324_v11  ;;  %1959 = vmatprep.mubr.msk.f32.mxu1 %vm2247_vm2, %v2248_v36 }
0x219e   :  { %2133 = vmatprep.subr.bf16.mxu1 %v2246_v10 }
0x21a1   :  { %2135 = vmatpush3.bf16.msra.mxu1 %v2330_v13 }
0x21a2   :  { %2136 = vmatprep.subr.bf16.mxu1 %v2246_v10 }
0x21a5   :  { %2138 = vmatpush3.bf16.msra.mxu1 %v2340_v16 }
0x21a6   :  { %2139 = vmatprep.subr.bf16.mxu1 %v2246_v10 }
0x21a9   :  { %2141 = vmatpush3.bf16.msra.mxu1 %v2350_v19 }
0x21aa   :  { %2142 = vmatprep.subr.bf16.mxu1 %v2246_v10 }
0x21ad   :  { %2144 = vmatpush3.bf16.msra.mxu1 %v2360_v22 }
0x21ae   :  { %2145 = vmatprep.subr.bf16.mxu1 %v2246_v10 }
0x21b1   :  { %2147 = vmatpush3.bf16.msra.mxu1 %v2370_v25 }
0x21b2   :  { %2148 = vmatprep.subr.bf16.mxu1 %v2246_v10 }
0x21b5   :  { %2150 = vmatpush3.bf16.msra.mxu1 %v2380_v28 }
0x21b6   :  { %2151 = vmatprep.subr.bf16.mxu1 %v2246_v10 }
0x21b9   :  { %2153 = vmatpush3.bf16.msra.mxu1 %v2395_v34 }
0x226f   :  { %v1319_v11 = vpop.f32.mrb[24].mxu1 }
0x2270   :  { %v1320_v13 = vadd.f32 %v1319_v11, %v2455_v18  ;;  %v1321_v16 = vpop.f32.mrb[25].mxu1 }
0x2271   :  { %v1323_v19 = vpop.f32.mrb[26].mxu1  ;;  %v1322_v43 = vadd.f32 %v1321_v16, %v2412_v39 }
0x2272   :  { %1326 = vst [vmem:[#allocation2 + $0xc] sm:$0x3] %v1320_v13  ;;  %v1324_v36 = vpop.f32.mrb[27].mxu1  ;;  %v1327_v22 = vsel %vm318_vm3, %v1320_v13, -inf }
0x2273   :  { %1328 = vmax.xlane.f32.xlu0 %v1327_v22 }
0x2300   :  { %v1329_v35 = vpop.xlane.xlu0 %1328 }
0x2301   :  { %vm1330_vm2 = vcmp.eq.f32.partialorder %v1320_v13, %v1329_v35 }
0x2302   :  { %v1331_v25 = vsel %vm1330_vm2, %v2385_v30, 128 }
0x2303   :  { %v1332_v28 = vsel %vm318_vm3, %v1331_v25, 2147483647 }
0x2304   :  { %v1334_v37 = vshra.s32 %v1332_v28, 16  ;;  %v1333_v34 = vand.u32 65535, %v1332_v28 }
0x2306   :  { %v1336_v10 = vcvt.s32.f32 %v1334_v37  ;;  %v1335_v41 = vcvt.s32.f32 %v1333_v34 }
0x2308   :  { %1337 = vmin.xlane.f32.xlu1 %v1336_v10 }
0x2395   :  { %v1338_v40 = vpop.xlane.xlu1 %1337 }
0x2396   :  { %vm1339_vm9 = vcmp.eq.f32.partialorder %v1336_v10, %v1338_v40  ;;  %v1344_v44 = vcvt.f32.s32 %v1338_v40 }
0x2397   :  { %v1340_v42 = vsel %vm1339_vm9, %v1335_v41, inf }
0x2398   :  { %1341 = vmin.xlane.f32.xlu0 %v1340_v42  ;;  %v1345_v46 = vshll.u32 %v1344_v44, 16 }
0x23ae   :  { %1428 = vrot.lane.b32.xlu0 %v1322_v43, %s2251_s3 }
0x2425   :  { %v1342_v45 = vpop.xlane.xlu0 %1341 }
0x2426   :  { %v1343_v47 = vcvt.f32.s32 %v1342_v45 }
0x2428   :  { %v1346_v48 = vadd.s32 %v1345_v46, %v1343_v47 }
0x2429   :  { %v1429_v55 = vpop.permute.xlu0 %1428 }
0x242a   :  { %vm1347_vm3 = vcmp.eq.s32.totalorder %v2385_v30, %v1346_v48 }
0x242b   :  { %1960 = vmatmul.mubr.msk.f32.vlgmr.msra.gmra.mrb[22].mxu1 %vm1347_vm3, %v2249_v38 }
0x24fe   :  { %v1416_v49 = vpop.f32.mrb[22].mxu1 }
0x24ff   :  { %v1420_v50 = vadd.f32 %v1416_v49, %v1322_v43  ;;  %v1961_v51 = vpop.f32.mrb[23].mxu1 }
0x2501   :  { %v1544_v52 = vmul.f32 -1.442695, %v1420_v50 }
0x2503   :  { %2211 = vpow2.f32 %v1544_v52 }
0x250d   :  { %v2212_v53 = vpop.eup %2211 }
0x250e   :  { %v1424_v54 = vadd.f32 1.0, %v2212_v53 }
0x2510   :  { %2213 = vrcp.f32 %v1424_v54 }
0x251a   :  { %v2214_v39 = vpop.eup %2213 }
0x251b   :  { %v1431_v56 = vmul.f32 %v2214_v39, %v1429_v55  ;;  %v1438_v30 = vsub.f32 1.0, %v2214_v39  ;;  %v1444_v60 = vmul.f32 %v2214_v39, %v2680_v33 }
0x251d   :  { %1433 = vrot.lane.b32.xlu1 %v1431_v56, %s2251_s3 }
0x258f   :  { %v1434_v57 = vpop.permute.xlu1 %1433 }
0x2590   :  { %v1436_v58 = vadd.f32 %v1434_v57, %v1416_v49 }
0x2592   :  { %2215 = vtanh.f32 %v1436_v58 }
0x259c   :  { %v2216_v59 = vpop.eup %2215 }
0x259d   :  { %1440 = vrot.lane.b32.xlu1 %v2216_v59, %s2252_s5 }
0x260f   :  { %v1441_v38 = vpop.permute.xlu1 %1440 }
0x2610   :  { %v1443_v61 = vmul.f32 %v1441_v38, %v1438_v30 }
0x2612   :  { %v1445_v62 = vadd.f32 %v1444_v60, %v1443_v61 }
0x2614   :  { %v1446_v63 = vpack.c.bf16 %v1445_v62, %v1445_v62 }
0x2616   :  { %1448 = vrot.lane.b32.xlu0 %v1446_v63, %s2252_s5 }
0x2688   :  { %v1449_v0 = vpop.permute.xlu0 %1448 }
0x2689   :  { %1545 = vmatmul.mubr.msk.bf16.vlgmr.msra.gmra.mrb[24].mxu0 %vm75_vm0, %v1449_v0 }
0x275c   :  { %v1487_v5 = vpop.f32.mrb[24].mxu0 }
0x275d   :  { %v1488_v6 = vadd.f32 %v1487_v5, %v2455_v18  ;;  %v1489_v7 = vpop.f32.mrb[25].mxu0 }
0x275e   :  { %v1490_v8 = vpop.f32.mrb[26].mxu0 }
0x275f   :  { %1493 = vst [vmem:[#allocation2 + $0xe] sm:$0x3] %v1488_v6  ;;  %v1491_v9 = vpop.f32.mrb[27].mxu0 }
0x2760   :  { %2232 = shalt.err (!%p2229_p4)
}
0x2761   :  { %s2233_s18 = scalar_lea.hbm %s2733_s4, 256 }
0x2762   :  { %p2234_p5 = scmp.ne.s32.totalorder %s2733_s4, %s2233_s18  ;;  %p2237_p6 = scmp.lt.u32.totalorder %s2233_s18, %s2733_s4 }
0x2764   :  { %p2239_p7 = pnand %p2237_p6, %p2234_p5 }
0x2766   :  { %2242 = shalt.err (!%p2239_p7)
}
0x2767   :  { %1503 = dma.vmem_to_hbm [thread:$0]  %s1501_s14, 256, %s2733_s4, [#allocation3]  }
0x2768   :  { %2243 = dma.done.wait [#allocation3], 256  }
0x2769   :  { %2244 = vsyncadd [#allocation3], 4294967040 }
0x276a   :  { %1507 = vsyncpa [#allocation3], 1 }

</bundles_post_ra>
